<compile_context>
chip_gen: v7x
topology: tpu7x:2x2x1
jax: 0.10.0
libtpu: 0.0.40
codegen_flags: <defaults>
</compile_context>

<pallas_src>
import math

import jax
import jax.numpy as jnp
from jax import lax
from jax.experimental import pallas as pl
from jax.experimental.pallas import tpu as pltpu

HIDDEN = 32        # hidden_size (d_model)
INNER = 64         # inner_size of the FFN
NUM_HEADS = 4      # num_attention_heads
HEAD_DIM = HIDDEN // NUM_HEADS
EPS = 1e-5
NEG = -1e9
PACK_W = 64        # common padded width of the parameter slabs

# wpack row ids (leading-axis indexed -> no lane-offset slicing)
WQ1, WK1, WV1, WO1, WQ2, WK2, WV2, WO2, WF1 = range(9)
# bpack row ids
(BQ1, BK1, BV1, BO1, BQ2, BK2, BV2, BO2,
 BF1, BF2, LN1G, LN1B, LN2G, LN2B, LN3G, LN3B) = range(16)


# ------------------------- one-time parameter prep --------------------------

def pack_decoder_block_params(p):
    """Pad every weight/bias to a common 64-col width, stack along the leading
    axis, fold 1/sqrt(head_dim) into the Q projections, cast weights to bf16.
    Done ONCE per parameter set (not per forward call)."""
    q_scale = 1.0 / math.sqrt(HEAD_DIM)

    def pad(a):
        return jnp.pad(a, ((0, 0), (0, PACK_W - a.shape[1])))

    wpack = jnp.stack([
        pad(p["q1_w"] * q_scale), pad(p["k1_w"]), pad(p["v1_w"]), pad(p["o1_w"]),
        pad(p["q2_w"] * q_scale), pad(p["k2_w"]), pad(p["v2_w"]), pad(p["o2_w"]),
        p["f1_w"],
    ]).astype(jnp.bfloat16)                                     # [9, H, 64]
    bpack = jnp.concatenate([
        pad(p["q1_b"] * q_scale), pad(p["k1_b"]), pad(p["v1_b"]), pad(p["o1_b"]),
        pad(p["q2_b"] * q_scale), pad(p["k2_b"]), pad(p["v2_b"]), pad(p["o2_b"]),
        p["f1_b"], pad(p["f2_b"]),
        pad(p["ln1_g"]), pad(p["ln1_b"]), pad(p["ln2_g"]), pad(p["ln2_b"]),
        pad(p["ln3_g"]), pad(p["ln3_b"]),
    ], axis=0).astype(jnp.float32)                              # [16, 64]
    wf2 = p["f2_w"].astype(jnp.bfloat16)                        # [INNER, H]
    return wpack, wf2, bpack


# ----------------------------- kernel helpers -------------------------------

def _layernorm(x, g, b):
    mu = jnp.mean(x, axis=-1, keepdims=True)
    var = jnp.mean((x - mu) ** 2, axis=-1, keepdims=True)
    return (x - mu) * lax.rsqrt(var + EPS) * g + b


def _softmax_rows(s):
    s = s - jnp.max(s, axis=-1, keepdims=True)
    e = jnp.exp(s)
    # denom >= 1 after max-subtraction, so the approx EUP reciprocal is enough.
    return e * pl.reciprocal(jnp.sum(e, axis=-1, keepdims=True), approx=True)


# -------------------------------- the kernel --------------------------------

def _make_kernel(B, T, S, shared_kq):
    BT, BS = B * T, B * S
    NHBT = NUM_HEADS * BT

    def kernel(*refs):
        if shared_kq:
            (dq_ref, enc_ref, keyc_ref, qb_ref,
             wp_ref, wf2_ref, bp_ref, out_ref) = refs
            dk_ref = dq_ref
        else:
            (dq_ref, dk_ref, enc_ref, keyc_ref, qb_ref,
             wp_ref, wf2_ref, bp_ref, out_ref) = refs

        dq = dq_ref[...]                      # [BT, H]   f32
        dk = dk_ref[...]                      # [BT, H]   f32
        enc = enc_ref[...]                    # [BS, H]   f32
        wp = wp_ref[...]                      # [9, H, 64] bf16
        wf2 = wf2_ref[...]                    # [INNER, H] bf16
        bp = bp_ref[...]                      # [16, 64]  f32

        # ---- head selector (which lanes belong to which head), built once ---
        lane = lax.broadcasted_iota(jnp.int32, (NUM_HEADS, 1, HIDDEN), 2)
        head = lax.broadcasted_iota(jnp.int32, (NUM_HEADS, 1, HIDDEN), 0)
        head_sel = (lane >= head * HEAD_DIM) & (lane < (head + 1) * HEAD_DIM)
        head_sel16 = head_sel.astype(jnp.bfloat16)     # [NH, 1, H]
        head_sel32 = head_sel.astype(jnp.float32)

        # ---- additive attention biases built in-kernel (no mask DMAs) -------
        q_batch = qb_ref[...]                                            # [BT,1]
        q_gidx = lax.broadcasted_iota(jnp.int32, (BT, 1), 0).astype(jnp.float32)
        q_pos = q_gidx - q_batch * T
        dk_code = keyc_ref[0:1, :BT]              # key batch id, -1 if padded
        dk_gidx = lax.broadcasted_iota(jnp.int32, (1, BT), 1).astype(jnp.float32)
        dk_pos = dk_gidx - dk_code * T
        ek_code = keyc_ref[1:2, :BS]
        # self: same batch & key kept & causal; cross: same batch & key kept
        self_bias = jnp.where((dk_code == q_batch) & (dk_pos <= q_pos), 0.0, NEG)
        cross_bias = jnp.where(ek_code == q_batch, 0.0, NEG)

        def mha(x_q, x_kv, bias, w0, b0, tk):
            """All-batch, all-head attention.  w0/b0 index the (q,k,v,o)
            rows of wpack/bpack; heads are batched by a head-block-diagonal
            query operand stacked along sublanes."""
            xq = x_q.astype(jnp.bfloat16)
            xk = x_kv.astype(jnp.bfloat16)
            q = jnp.dot(xq, wp[w0, :, :HIDDEN],
                        preferred_element_type=jnp.float32) + bp[b0:b0 + 1, :HIDDEN]
            k = jnp.dot(xk, wp[w0 + 1, :, :HIDDEN],
                        preferred_element_type=jnp.float32) + bp[b0 + 1:b0 + 2, :HIDDEN]
            v = jnp.dot(xk, wp[w0 + 2, :, :HIDDEN],
                        preferred_element_type=jnp.float32) + bp[b0 + 2:b0 + 3, :HIDDEN]
            # row h*BT+i of qbd holds q[i] masked to head h's lanes
            qbd = (jnp.broadcast_to(q.astype(jnp.bfloat16)[None],
                                    (NUM_HEADS, BT, HIDDEN))
                   * head_sel16).reshape(NHBT, HIDDEN)
            s = lax.dot_general(qbd, k.astype(jnp.bfloat16),
                                (((1,), (1,)), ((), ())),
                                preferred_element_type=jnp.float32)   # [NH*BT, tk]
            s = s + jnp.broadcast_to(bias[None],
                                     (NUM_HEADS, BT, tk)).reshape(NHBT, tk)
            p = _softmax_rows(s)                                       # f32
            ctx = jnp.dot(p.astype(jnp.bfloat16), v.astype(jnp.bfloat16),
                          preferred_element_type=jnp.float32)          # [NH*BT, H]
            # merge heads: pick head h's HEAD_DIM columns from its row block
            ctx = jnp.sum(ctx.reshape(NUM_HEADS, BT, HIDDEN) * head_sel32, axis=0)
            return (jnp.dot(ctx.astype(jnp.bfloat16), wp[w0 + 3, :, :HIDDEN],
                            preferred_element_type=jnp.float32)
                    + bp[b0 + 3:b0 + 4, :HIDDEN])

        # ---- self attention -> residual -> LN1 (post-LN order) ----
        sa = mha(dq, dk, self_bias, WQ1, BQ1, BT) + dq
        sa = _layernorm(sa, bp[LN1G:LN1G + 1, :HIDDEN], bp[LN1B:LN1B + 1, :HIDDEN])
        # ---- cross attention -> residual -> LN2 ----
        ca = mha(sa, enc, cross_bias, WQ2, BQ2, BS) + sa
        ca = _layernorm(ca, bp[LN2G:LN2G + 1, :HIDDEN], bp[LN2B:LN2B + 1, :HIDDEN])
        # ---- position-wise FFN (relu) -> residual -> LN3 ----
        h1 = jnp.maximum(
            jnp.dot(ca.astype(jnp.bfloat16), wp[WF1],
                    preferred_element_type=jnp.float32) + bp[BF1:BF1 + 1, :], 0.0)
        ff = jnp.dot(h1.astype(jnp.bfloat16), wf2,
                     preferred_element_type=jnp.float32) + bp[BF2:BF2 + 1, :HIDDEN]
        out_ref[...] = _layernorm(ff + ca, bp[LN3G:LN3G + 1, :HIDDEN],
                                  bp[LN3B:LN3B + 1, :HIDDEN])

    return kernel


# --------------------------------- wrapper ----------------------------------

def transformer_decoder_block(decoder_query, decoder_keep, decoder_keys,
                              encoder_states, encoder_keep, packed_params):
    """Post-LN TransformerDecoderBlock forward.

    decoder_keep: [B, T] 1/0 key-padding mask for the decoder sequence (the
    causal structure is built in-kernel).  encoder_keep: [B, S] key-padding
    mask for the encoder memory.
    """
    # TODO(synk): arbitrary dense additive attention masks (beyond causal +
    # key padding) would have to be passed as explicit [B*T, B*T]/[B*T, B*S]
    # bias inputs instead of the compact in-kernel construction used here.
    wpack, wf2, bpack = packed_params
    B, T, Hd = decoder_query.shape
    S = encoder_states.shape[1]
    assert Hd == HIDDEN
    BT, BS = B * T, B * S
    KA = max(BT, BS)

    shared_kq = decoder_keys is decoder_query
    dq = decoder_query.reshape(BT, HIDDEN)
    enc = encoder_states.reshape(BS, HIDDEN)

    # tiny per-key/per-query index vectors (replace the full additive masks)
    batch_ids = jnp.arange(B, dtype=jnp.float32)[:, None]               # [B,1]
    dk_code = jnp.where(decoder_keep > 0, batch_ids, -1.0).reshape(BT)
    ek_code = jnp.where(encoder_keep > 0, batch_ids, -1.0).reshape(BS)
    key_codes = jnp.stack([jnp.pad(dk_code, (0, KA - BT), constant_values=-1.0),
                           jnp.pad(ek_code, (0, KA - BS), constant_values=-1.0)])
    q_batch = jnp.broadcast_to(batch_ids, (B, T)).reshape(BT, 1)

    def full(shape):
        n = len(shape)
        return pl.BlockSpec(shape, lambda i, n=n: (0,) * n)

    operands = [dq]
    in_specs = [full((BT, HIDDEN))]
    if not shared_kq:
        operands.append(decoder_keys.reshape(BT, HIDDEN))
        in_specs.append(full((BT, HIDDEN)))
    operands += [enc, key_codes, q_batch, wpack, wf2, bpack]
    in_specs += [full((BS, HIDDEN)), full((2, KA)), full((BT, 1)),
                 full(tuple(wpack.shape)), full(tuple(wf2.shape)),
                 full(tuple(bpack.shape))]

    out_flat = pl.pallas_call(
        _make_kernel(B, T, S, shared_kq),
        out_shape=jax.ShapeDtypeStruct((BT, HIDDEN), jnp.float32),
        # TODO(synk): for large B*T, tile the grid over row blocks (marked
        # "parallel") so v7x's second TensorCore is used and VMEM stays
        # bounded; a single step is optimal at this problem size.
        grid=(1,),
        in_specs=in_specs,
        out_specs=full((BT, HIDDEN)),
        compiler_params=pltpu.CompilerParams(
            dimension_semantics=("arbitrary",)),
    )(*operands)
    return out_flat.reshape(B, T, HIDDEN)


# --------------------------- pure-JAX reference -----------------------------

def _ref_ln(x, g, b):
    mu = jnp.mean(x, axis=-1, keepdims=True)
    var = jnp.mean((x - mu) ** 2, axis=-1, keepdims=True)
    return (x - mu) * jax.lax.rsqrt(var + EPS) * g + b


def _ref_mha(qi, kvi, mask, qw, qb, kw, kb, vw, vb, ow, ob):
    q = qi @ qw + qb
    k = kvi @ kw + kb
    v = kvi @ vw + vb
    split = lambda x: x.reshape(x.shape[0], x.shape[1], NUM_HEADS,
                                HEAD_DIM).transpose(0, 2, 1, 3)
    scale = 1.0 / math.sqrt(math.sqrt(HEAD_DIM))   # NeMo scales q and k each
    qh, kh, vh = split(q) * scale, split(k) * scale, split(v)
    s = jnp.einsum('bhqd,bhkd->bhqk', qh, kh) + mask[:, None]
    pr = jax.nn.softmax(s, axis=-1)
    ctx = jnp.einsum('bhqk,bhkd->bhqd', pr, vh)
    ctx = ctx.transpose(0, 2, 1, 3).reshape(qi.shape[0], qi.shape[1], HIDDEN)
    return ctx @ ow + ob


def reference_block(dq, dkeep, dk, enc, ekeep, p):
    B, T, _ = dq.shape
    S = enc.shape[1]
    causal = jnp.tril(jnp.ones((T, T), jnp.float32))
    dmask = jnp.where((causal[None] * dkeep[:, None, :]) > 0, 0.0, NEG)
    emask = jnp.broadcast_to(jnp.where(ekeep[:, None, :] > 0, 0.0, NEG), (B, T, S))
    sa = _ref_mha(dq, dk, dmask, p["q1_w"], p["q1_b"], p["k1_w"], p["k1_b"],
                  p["v1_w"], p["v1_b"], p["o1_w"], p["o1_b"])
    sa = _ref_ln(sa + dq, p["ln1_g"], p["ln1_b"])
    ca = _ref_mha(sa, enc, emask, p["q2_w"], p["q2_b"], p["k2_w"], p["k2_b"],
                  p["v2_w"], p["v2_b"], p["o2_w"], p["o2_b"])
    ca = _ref_ln(ca + sa, p["ln2_g"], p["ln2_b"])
    ff = jnp.maximum(ca @ p["f1_w"] + p["f1_b"], 0.0) @ p["f2_w"] + p["f2_b"]
    return _ref_ln(ff + ca, p["ln3_g"], p["ln3_b"])


# ---------------------------------- main ------------------------------------

if __name__ == "__main__":
    B, T, S = 2, 8, 12
    key = jax.random.PRNGKey(0)
    keys = jax.random.split(key, 32)
    ki = iter(keys)

    def rnd(shape, scale=0.05):
        return jax.random.normal(next(ki), shape, dtype=jnp.float32) * scale

    params = {
        "ln1_g": jnp.ones((1, HIDDEN), jnp.float32), "ln1_b": jnp.zeros((1, HIDDEN), jnp.float32),
        "ln2_g": jnp.ones((1, HIDDEN), jnp.float32), "ln2_b": jnp.zeros((1, HIDDEN), jnp.float32),
        "ln3_g": jnp.ones((1, HIDDEN), jnp.float32), "ln3_b": jnp.zeros((1, HIDDEN), jnp.float32),
        "q1_w": rnd((HIDDEN, HIDDEN)), "q1_b": rnd((1, HIDDEN)),
        "k1_w": rnd((HIDDEN, HIDDEN)), "k1_b": rnd((1, HIDDEN)),
        "v1_w": rnd((HIDDEN, HIDDEN)), "v1_b": rnd((1, HIDDEN)),
        "o1_w": rnd((HIDDEN, HIDDEN)), "o1_b": rnd((1, HIDDEN)),
        "q2_w": rnd((HIDDEN, HIDDEN)), "q2_b": rnd((1, HIDDEN)),
        "k2_w": rnd((HIDDEN, HIDDEN)), "k2_b": rnd((1, HIDDEN)),
        "v2_w": rnd((HIDDEN, HIDDEN)), "v2_b": rnd((1, HIDDEN)),
        "o2_w": rnd((HIDDEN, HIDDEN)), "o2_b": rnd((1, HIDDEN)),
        "f1_w": rnd((HIDDEN, INNER)), "f1_b": rnd((1, INNER)),
        "f2_w": rnd((INNER, HIDDEN)), "f2_b": rnd((1, HIDDEN)),
    }

    decoder_query = jax.random.normal(next(ki), (B, T, HIDDEN), dtype=jnp.float32)
    decoder_keys = decoder_query                     # shared -> dk DMA skipped
    encoder_states = jax.random.normal(next(ki), (B, S, HIDDEN), dtype=jnp.float32)

    # padding keep-masks (1 = attend, 0 = padded key)
    decoder_keep = jnp.ones((B, T), jnp.float32).at[1, -1].set(0.0)
    encoder_keep = jnp.ones((B, S), jnp.float32).at[1, -3:].set(0.0)

    packed = pack_decoder_block_params(params)       # one-time parameter prep

    out = transformer_decoder_block(decoder_query, decoder_keep, decoder_keys,
                                    encoder_states, encoder_keep, packed)
    out = jax.block_until_ready(out)

    ref = reference_block(decoder_query, decoder_keep, decoder_keys,
                          encoder_states, encoder_keep, params)
    assert out.shape == (B, T, HIDDEN)
    # bf16 MXU operands vs the f32 reference -> a few e-3 expected worst case.
    assert bool(jnp.allclose(out, ref, atol=2e-2, rtol=2e-2)), "mismatch vs reference"

    print("KERNEL_OK")
</pallas_src>

<mosaic_0001>
module attributes {stable_mosaic.version = 11 : i64} {
  func.func @kernel(%arg0: i32, %arg1: memref<16x32xf32, #tpu.memory_space<vmem>>, %arg2: memref<24x32xf32, #tpu.memory_space<vmem>>, %arg3: memref<2x24xf32, #tpu.memory_space<vmem>>, %arg4: memref<16x1xf32, #tpu.memory_space<vmem>>, %arg5: memref<9x32x64xbf16, #tpu.memory_space<vmem>>, %arg6: memref<64x32xbf16, #tpu.memory_space<vmem>>, %arg7: memref<16x64xf32, #tpu.memory_space<vmem>>, %arg8: memref<16x32xf32, #tpu.memory_space<vmem>>) attributes {dimension_semantics = [#tpu.dimension_semantics<arbitrary>], iteration_bounds = array<i64: 1>, scalar_prefetch = 0 : i64, scratch_operands = 0 : i64, tpu.core_type = #tpu.core_type<tc>, window_params = [{pipeline_mode = #tpu.pipeline_mode<synchronous>, transform_indices = @transform_0, window_bounds = array<i64: 16, 32>}, {pipeline_mode = #tpu.pipeline_mode<synchronous>, transform_indices = @transform_1, window_bounds = array<i64: 24, 32>}, {pipeline_mode = #tpu.pipeline_mode<synchronous>, transform_indices = @transform_2, window_bounds = array<i64: 2, 24>}, {pipeline_mode = #tpu.pipeline_mode<synchronous>, transform_indices = @transform_3, window_bounds = array<i64: 16, 1>}, {pipeline_mode = #tpu.pipeline_mode<synchronous>, transform_indices = @transform_4, window_bounds = array<i64: 9, 32, 64>}, {pipeline_mode = #tpu.pipeline_mode<synchronous>, transform_indices = @transform_5, window_bounds = array<i64: 64, 32>}, {pipeline_mode = #tpu.pipeline_mode<synchronous>, transform_indices = @transform_6, window_bounds = array<i64: 16, 64>}, {pipeline_mode = #tpu.pipeline_mode<synchronous>, transform_indices = @transform_7, window_bounds = array<i64: 16, 32>}]} {
    %c0 = arith.constant 0 : index
    %c0_0 = arith.constant 0 : index
    %0 = vector.load %arg1[%c0, %c0_0] : memref<16x32xf32, #tpu.memory_space<vmem>>, vector<16x32xf32>
    %c0_1 = arith.constant 0 : index
    %c0_2 = arith.constant 0 : index
    %1 = vector.load %arg1[%c0_1, %c0_2] : memref<16x32xf32, #tpu.memory_space<vmem>>, vector<16x32xf32>
    %c0_3 = arith.constant 0 : index
    %c0_4 = arith.constant 0 : index
    %2 = vector.load %arg2[%c0_3, %c0_4] : memref<24x32xf32, #tpu.memory_space<vmem>>, vector<24x32xf32>
    %c0_5 = arith.constant 0 : index
    %c0_6 = arith.constant 0 : index
    %c0_7 = arith.constant 0 : index
    %3 = vector.load %arg5[%c0_5, %c0_6, %c0_7] : memref<9x32x64xbf16, #tpu.memory_space<vmem>>, vector<9x32x64xbf16>
    %c0_8 = arith.constant 0 : index
    %c0_9 = arith.constant 0 : index
    %4 = vector.load %arg6[%c0_8, %c0_9] : memref<64x32xbf16, #tpu.memory_space<vmem>>, vector<64x32xbf16>
    %c0_10 = arith.constant 0 : index
    %c0_11 = arith.constant 0 : index
    %5 = vector.load %arg7[%c0_10, %c0_11] : memref<16x64xf32, #tpu.memory_space<vmem>>, vector<16x64xf32>
    %6 = tpu.iota {dimensions = array<i32: 2>} : vector<4x1x32xi32>
    %7 = tpu.iota {dimensions = array<i32: 0>} : vector<4x1x32xi32>
    %c8_i32 = arith.constant 8 : i32
    %8 = vector.broadcast %c8_i32 : i32 to vector<4x1x32xi32>
    %9 = arith.muli %7, %8 : vector<4x1x32xi32>
    %10 = arith.cmpi sge, %6, %9 : vector<4x1x32xi32>
    %c1_i32 = arith.constant 1 : i32
    %11 = vector.broadcast %c1_i32 : i32 to vector<4x1x32xi32>
    %12 = arith.addi %7, %11 : vector<4x1x32xi32>
    %c8_i32_12 = arith.constant 8 : i32
    %13 = vector.broadcast %c8_i32_12 : i32 to vector<4x1x32xi32>
    %14 = arith.muli %12, %13 : vector<4x1x32xi32>
    %15 = arith.cmpi slt, %6, %14 : vector<4x1x32xi32>
    %16 = arith.andi %10, %15 : vector<4x1x32xi1>
    %17 = arith.extui %16 : vector<4x1x32xi1> to vector<4x1x32xi32>
    %18 = arith.sitofp %17 : vector<4x1x32xi32> to vector<4x1x32xf32>
    %19 = arith.truncf %18 : vector<4x1x32xf32> to vector<4x1x32xbf16>
    %20 = arith.extui %16 : vector<4x1x32xi1> to vector<4x1x32xi32>
    %21 = arith.sitofp %20 : vector<4x1x32xi32> to vector<4x1x32xf32>
    %c0_13 = arith.constant 0 : index
    %c0_14 = arith.constant 0 : index
    %22 = vector.load %arg4[%c0_13, %c0_14] : memref<16x1xf32, #tpu.memory_space<vmem>>, vector<16x1xf32>
    %23 = tpu.iota {dimensions = array<i32: 0>} : vector<16x1xi32>
    %24 = arith.sitofp %23 : vector<16x1xi32> to vector<16x1xf32>
    %cst = arith.constant 8.000000e+00 : f32
    %25 = vector.broadcast %cst : f32 to vector<16x1xf32>
    %26 = arith.mulf %22, %25 : vector<16x1xf32>
    %27 = arith.subf %24, %26 : vector<16x1xf32>
    %c0_15 = arith.constant 0 : index
    %c0_16 = arith.constant 0 : index
    %28 = vector.load %arg3[%c0_15, %c0_16] : memref<2x24xf32, #tpu.memory_space<vmem>>, vector<1x16xf32>
    %29 = tpu.iota {dimensions = array<i32: 1>} : vector<1x16xi32>
    %30 = arith.sitofp %29 : vector<1x16xi32> to vector<1x16xf32>
    %cst_17 = arith.constant 8.000000e+00 : f32
    %31 = vector.broadcast %cst_17 : f32 to vector<1x16xf32>
    %32 = arith.mulf %28, %31 : vector<1x16xf32>
    %33 = arith.subf %30, %32 : vector<1x16xf32>
    %c1 = arith.constant 1 : index
    %c0_18 = arith.constant 0 : index
    %34 = vector.load %arg3[%c1, %c0_18] : memref<2x24xf32, #tpu.memory_space<vmem>>, vector<1x24xf32>
    %35 = vector.broadcast %28 : vector<1x16xf32> to vector<16x16xf32>
    %36 = vector.broadcast %22 : vector<16x1xf32> to vector<16x16xf32>
    %37 = arith.cmpf oeq, %35, %36 : vector<16x16xf32>
    %38 = vector.broadcast %33 : vector<1x16xf32> to vector<16x16xf32>
    %39 = vector.broadcast %27 : vector<16x1xf32> to vector<16x16xf32>
    %40 = arith.cmpf ole, %38, %39 : vector<16x16xf32>
    %41 = arith.andi %37, %40 : vector<16x16xi1>
    %cst_19 = arith.constant 0.000000e+00 : f32
    %cst_20 = arith.constant -1.000000e+09 : f32
    %42 = vector.broadcast %cst_19 : f32 to vector<16x16xf32>
    %43 = vector.broadcast %cst_20 : f32 to vector<16x16xf32>
    %44 = arith.select %41, %42, %43 : vector<16x16xi1>, vector<16x16xf32>
    %45 = vector.broadcast %34 : vector<1x24xf32> to vector<16x24xf32>
    %46 = vector.broadcast %22 : vector<16x1xf32> to vector<16x24xf32>
    %47 = arith.cmpf oeq, %45, %46 : vector<16x24xf32>
    %cst_21 = arith.constant 0.000000e+00 : f32
    %cst_22 = arith.constant -1.000000e+09 : f32
    %48 = vector.broadcast %cst_21 : f32 to vector<16x24xf32>
    %49 = vector.broadcast %cst_22 : f32 to vector<16x24xf32>
    %50 = arith.select %47, %48, %49 : vector<16x24xi1>, vector<16x24xf32>
    %51 = arith.truncf %0 : vector<16x32xf32> to vector<16x32xbf16>
    %52 = arith.truncf %1 : vector<16x32xf32> to vector<16x32xbf16>
    %53 = vector.extract_strided_slice %3 {offsets = [0, 0, 0], sizes = [1, 32, 32], strides = [1, 1, 1]} : vector<9x32x64xbf16> to vector<1x32x32xbf16>
    %54 = vector.shape_cast %53 : vector<1x32x32xbf16> to vector<32x32xbf16>
    %cst_23 = arith.constant dense<0.000000e+00> : vector<16x32xf32>
    %55 = tpu.matmul %51, %54, %cst_23 {dimension_numbers = #tpu.dot_dimension_numbers<[1], [0], [0], [1], [0, 0, 1, 1], [], []>} : vector<16x32xbf16>, vector<32x32xbf16>, vector<16x32xf32> -> vector<16x32xf32>
    %56 = vector.extract_strided_slice %5 {offsets = [0, 0], sizes = [1, 32], strides = [1, 1]} : vector<16x64xf32> to vector<1x32xf32>
    %57 = vector.broadcast %56 : vector<1x32xf32> to vector<16x32xf32>
    %58 = arith.addf %55, %57 : vector<16x32xf32>
    %59 = vector.extract_strided_slice %3 {offsets = [1, 0, 0], sizes = [1, 32, 32], strides = [1, 1, 1]} : vector<9x32x64xbf16> to vector<1x32x32xbf16>
    %60 = vector.shape_cast %59 : vector<1x32x32xbf16> to vector<32x32xbf16>
    %cst_24 = arith.constant dense<0.000000e+00> : vector<16x32xf32>
    %61 = tpu.matmul %52, %60, %cst_24 {dimension_numbers = #tpu.dot_dimension_numbers<[1], [0], [0], [1], [0, 0, 1, 1], [], []>} : vector<16x32xbf16>, vector<32x32xbf16>, vector<16x32xf32> -> vector<16x32xf32>
    %62 = vector.extract_strided_slice %5 {offsets = [1, 0], sizes = [1, 32], strides = [1, 1]} : vector<16x64xf32> to vector<1x32xf32>
    %63 = vector.broadcast %62 : vector<1x32xf32> to vector<16x32xf32>
    %64 = arith.addf %61, %63 : vector<16x32xf32>
    %65 = vector.extract_strided_slice %3 {offsets = [2, 0, 0], sizes = [1, 32, 32], strides = [1, 1, 1]} : vector<9x32x64xbf16> to vector<1x32x32xbf16>
    %66 = vector.shape_cast %65 : vector<1x32x32xbf16> to vector<32x32xbf16>
    %cst_25 = arith.constant dense<0.000000e+00> : vector<16x32xf32>
    %67 = tpu.matmul %52, %66, %cst_25 {dimension_numbers = #tpu.dot_dimension_numbers<[1], [0], [0], [1], [0, 0, 1, 1], [], []>} : vector<16x32xbf16>, vector<32x32xbf16>, vector<16x32xf32> -> vector<16x32xf32>
    %68 = vector.extract_strided_slice %5 {offsets = [2, 0], sizes = [1, 32], strides = [1, 1]} : vector<16x64xf32> to vector<1x32xf32>
    %69 = vector.broadcast %68 : vector<1x32xf32> to vector<16x32xf32>
    %70 = arith.addf %67, %69 : vector<16x32xf32>
    %71 = arith.truncf %58 : vector<16x32xf32> to vector<16x32xbf16>
    %72 = vector.shape_cast %71 : vector<16x32xbf16> to vector<1x16x32xbf16>
    %73 = vector.shape_cast %72 : vector<1x16x32xbf16> to vector<1x16x32xbf16>
    %74 = vector.broadcast %73 : vector<1x16x32xbf16> to vector<4x16x32xbf16>
    %75 = vector.broadcast %19 : vector<4x1x32xbf16> to vector<4x16x32xbf16>
    %76 = arith.mulf %74, %75 : vector<4x16x32xbf16>
    %77 = vector.shape_cast %76 : vector<4x16x32xbf16> to vector<64x32xbf16>
    %78 = arith.truncf %64 : vector<16x32xf32> to vector<16x32xbf16>
    %cst_26 = arith.constant dense<0.000000e+00> : vector<64x16xf32>
    %79 = tpu.matmul %77, %78, %cst_26 {dimension_numbers = #tpu.dot_dimension_numbers<[1], [1], [0], [0], [0, 0, 1, 0], [], []>} : vector<64x32xbf16>, vector<16x32xbf16>, vector<64x16xf32> -> vector<64x16xf32>
    %80 = vector.shape_cast %44 : vector<16x16xf32> to vector<1x16x16xf32>
    %81 = vector.shape_cast %80 : vector<1x16x16xf32> to vector<1x16x16xf32>
    %82 = vector.broadcast %81 : vector<1x16x16xf32> to vector<4x16x16xf32>
    %83 = vector.shape_cast %82 : vector<4x16x16xf32> to vector<64x16xf32>
    %84 = arith.addf %79, %83 : vector<64x16xf32>
    %cst_27 = arith.constant dense<0xFF800000> : vector<64xf32>
    %85 = vector.multi_reduction <maximumf>, %84, %cst_27 [1] : vector<64x16xf32> to vector<64xf32>
    %86 = vector.shape_cast %85 : vector<64xf32> to vector<64x1xf32>
    %87 = vector.broadcast %86 : vector<64x1xf32> to vector<64x16xf32>
    %88 = arith.subf %84, %87 : vector<64x16xf32>
    %89 = math.exp %88 : vector<64x16xf32>
    %cst_28 = arith.constant dense<0.000000e+00> : vector<64xf32>
    %90 = vector.multi_reduction <add>, %89, %cst_28 [1] : vector<64x16xf32> to vector<64xf32>
    %91 = vector.shape_cast %90 : vector<64xf32> to vector<64x1xf32>
    %92 = tpu.reciprocal %91 {approx = true} : vector<64x1xf32> -> vector<64x1xf32>
    %93 = vector.broadcast %92 : vector<64x1xf32> to vector<64x16xf32>
    %94 = arith.mulf %89, %93 : vector<64x16xf32>
    %95 = arith.truncf %94 : vector<64x16xf32> to vector<64x16xbf16>
    %96 = arith.truncf %70 : vector<16x32xf32> to vector<16x32xbf16>
    %cst_29 = arith.constant dense<0.000000e+00> : vector<64x32xf32>
    %97 = tpu.matmul %95, %96, %cst_29 {dimension_numbers = #tpu.dot_dimension_numbers<[1], [0], [0], [1], [0, 0, 1, 1], [], []>} : vector<64x16xbf16>, vector<16x32xbf16>, vector<64x32xf32> -> vector<64x32xf32>
    %98 = vector.shape_cast %97 : vector<64x32xf32> to vector<4x16x32xf32>
    %99 = vector.broadcast %21 : vector<4x1x32xf32> to vector<4x16x32xf32>
    %100 = arith.mulf %98, %99 : vector<4x16x32xf32>
    %cst_30 = arith.constant dense<0.000000e+00> : vector<16x32xf32>
    %101 = vector.multi_reduction <add>, %100, %cst_30 [0] : vector<4x16x32xf32> to vector<16x32xf32>
    %102 = arith.truncf %101 : vector<16x32xf32> to vector<16x32xbf16>
    %103 = vector.extract_strided_slice %3 {offsets = [3, 0, 0], sizes = [1, 32, 32], strides = [1, 1, 1]} : vector<9x32x64xbf16> to vector<1x32x32xbf16>
    %104 = vector.shape_cast %103 : vector<1x32x32xbf16> to vector<32x32xbf16>
    %cst_31 = arith.constant dense<0.000000e+00> : vector<16x32xf32>
    %105 = tpu.matmul %102, %104, %cst_31 {dimension_numbers = #tpu.dot_dimension_numbers<[1], [0], [0], [1], [0, 0, 1, 1], [], []>} : vector<16x32xbf16>, vector<32x32xbf16>, vector<16x32xf32> -> vector<16x32xf32>
    %106 = vector.extract_strided_slice %5 {offsets = [3, 0], sizes = [1, 32], strides = [1, 1]} : vector<16x64xf32> to vector<1x32xf32>
    %107 = vector.broadcast %106 : vector<1x32xf32> to vector<16x32xf32>
    %108 = arith.addf %105, %107 : vector<16x32xf32>
    %109 = arith.addf %108, %0 : vector<16x32xf32>
    %110 = vector.extract_strided_slice %5 {offsets = [10, 0], sizes = [1, 32], strides = [1, 1]} : vector<16x64xf32> to vector<1x32xf32>
    %111 = vector.extract_strided_slice %5 {offsets = [11, 0], sizes = [1, 32], strides = [1, 1]} : vector<16x64xf32> to vector<1x32xf32>
    %cst_32 = arith.constant dense<0.000000e+00> : vector<16xf32>
    %112 = vector.multi_reduction <add>, %109, %cst_32 [1] : vector<16x32xf32> to vector<16xf32>
    %113 = vector.shape_cast %112 : vector<16xf32> to vector<16x1xf32>
    %cst_33 = arith.constant 3.200000e+01 : f32
    %114 = vector.broadcast %cst_33 : f32 to vector<16x1xf32>
    %115 = arith.divf %113, %114 : vector<16x1xf32>
    %116 = vector.broadcast %115 : vector<16x1xf32> to vector<16x32xf32>
    %117 = arith.subf %109, %116 : vector<16x32xf32>
    %118 = arith.mulf %117, %117 : vector<16x32xf32>
    %cst_34 = arith.constant dense<0.000000e+00> : vector<16xf32>
    %119 = vector.multi_reduction <add>, %118, %cst_34 [1] : vector<16x32xf32> to vector<16xf32>
    %120 = vector.shape_cast %119 : vector<16xf32> to vector<16x1xf32>
    %cst_35 = arith.constant 3.200000e+01 : f32
    %121 = vector.broadcast %cst_35 : f32 to vector<16x1xf32>
    %122 = arith.divf %120, %121 : vector<16x1xf32>
    %123 = vector.broadcast %115 : vector<16x1xf32> to vector<16x32xf32>
    %124 = arith.subf %109, %123 : vector<16x32xf32>
    %cst_36 = arith.constant 9.99999974E-6 : f32
    %125 = vector.broadcast %cst_36 : f32 to vector<16x1xf32>
    %126 = arith.addf %122, %125 : vector<16x1xf32>
    %127 = math.rsqrt %126 : vector<16x1xf32>
    %128 = vector.broadcast %127 : vector<16x1xf32> to vector<16x32xf32>
    %129 = arith.mulf %124, %128 : vector<16x32xf32>
    %130 = vector.broadcast %110 : vector<1x32xf32> to vector<16x32xf32>
    %131 = arith.mulf %129, %130 : vector<16x32xf32>
    %132 = vector.broadcast %111 : vector<1x32xf32> to vector<16x32xf32>
    %133 = arith.addf %131, %132 : vector<16x32xf32>
    %134 = arith.truncf %133 : vector<16x32xf32> to vector<16x32xbf16>
    %135 = arith.truncf %2 : vector<24x32xf32> to vector<24x32xbf16>
    %136 = vector.extract_strided_slice %3 {offsets = [4, 0, 0], sizes = [1, 32, 32], strides = [1, 1, 1]} : vector<9x32x64xbf16> to vector<1x32x32xbf16>
    %137 = vector.shape_cast %136 : vector<1x32x32xbf16> to vector<32x32xbf16>
    %cst_37 = arith.constant dense<0.000000e+00> : vector<16x32xf32>
    %138 = tpu.matmul %134, %137, %cst_37 {dimension_numbers = #tpu.dot_dimension_numbers<[1], [0], [0], [1], [0, 0, 1, 1], [], []>} : vector<16x32xbf16>, vector<32x32xbf16>, vector<16x32xf32> -> vector<16x32xf32>
    %139 = vector.extract_strided_slice %5 {offsets = [4, 0], sizes = [1, 32], strides = [1, 1]} : vector<16x64xf32> to vector<1x32xf32>
    %140 = vector.broadcast %139 : vector<1x32xf32> to vector<16x32xf32>
    %141 = arith.addf %138, %140 : vector<16x32xf32>
    %142 = vector.extract_strided_slice %3 {offsets = [5, 0, 0], sizes = [1, 32, 32], strides = [1, 1, 1]} : vector<9x32x64xbf16> to vector<1x32x32xbf16>
    %143 = vector.shape_cast %142 : vector<1x32x32xbf16> to vector<32x32xbf16>
    %cst_38 = arith.constant dense<0.000000e+00> : vector<24x32xf32>
    %144 = tpu.matmul %135, %143, %cst_38 {dimension_numbers = #tpu.dot_dimension_numbers<[1], [0], [0], [1], [0, 0, 1, 1], [], []>} : vector<24x32xbf16>, vector<32x32xbf16>, vector<24x32xf32> -> vector<24x32xf32>
    %145 = vector.extract_strided_slice %5 {offsets = [5, 0], sizes = [1, 32], strides = [1, 1]} : vector<16x64xf32> to vector<1x32xf32>
    %146 = vector.broadcast %145 : vector<1x32xf32> to vector<24x32xf32>
    %147 = arith.addf %144, %146 : vector<24x32xf32>
    %148 = vector.extract_strided_slice %3 {offsets = [6, 0, 0], sizes = [1, 32, 32], strides = [1, 1, 1]} : vector<9x32x64xbf16> to vector<1x32x32xbf16>
    %149 = vector.shape_cast %148 : vector<1x32x32xbf16> to vector<32x32xbf16>
    %cst_39 = arith.constant dense<0.000000e+00> : vector<24x32xf32>
    %150 = tpu.matmul %135, %149, %cst_39 {dimension_numbers = #tpu.dot_dimension_numbers<[1], [0], [0], [1], [0, 0, 1, 1], [], []>} : vector<24x32xbf16>, vector<32x32xbf16>, vector<24x32xf32> -> vector<24x32xf32>
    %151 = vector.extract_strided_slice %5 {offsets = [6, 0], sizes = [1, 32], strides = [1, 1]} : vector<16x64xf32> to vector<1x32xf32>
    %152 = vector.broadcast %151 : vector<1x32xf32> to vector<24x32xf32>
    %153 = arith.addf %150, %152 : vector<24x32xf32>
    %154 = arith.truncf %141 : vector<16x32xf32> to vector<16x32xbf16>
    %155 = vector.shape_cast %154 : vector<16x32xbf16> to vector<1x16x32xbf16>
    %156 = vector.shape_cast %155 : vector<1x16x32xbf16> to vector<1x16x32xbf16>
    %157 = vector.broadcast %156 : vector<1x16x32xbf16> to vector<4x16x32xbf16>
    %158 = vector.broadcast %19 : vector<4x1x32xbf16> to vector<4x16x32xbf16>
    %159 = arith.mulf %157, %158 : vector<4x16x32xbf16>
    %160 = vector.shape_cast %159 : vector<4x16x32xbf16> to vector<64x32xbf16>
    %161 = arith.truncf %147 : vector<24x32xf32> to vector<24x32xbf16>
    %cst_40 = arith.constant dense<0.000000e+00> : vector<64x24xf32>
    %162 = tpu.matmul %160, %161, %cst_40 {dimension_numbers = #tpu.dot_dimension_numbers<[1], [1], [0], [0], [0, 0, 1, 0], [], []>} : vector<64x32xbf16>, vector<24x32xbf16>, vector<64x24xf32> -> vector<64x24xf32>
    %163 = vector.shape_cast %50 : vector<16x24xf32> to vector<1x16x24xf32>
    %164 = vector.shape_cast %163 : vector<1x16x24xf32> to vector<1x16x24xf32>
    %165 = vector.broadcast %164 : vector<1x16x24xf32> to vector<4x16x24xf32>
    %166 = vector.shape_cast %165 : vector<4x16x24xf32> to vector<64x24xf32>
    %167 = arith.addf %162, %166 : vector<64x24xf32>
    %cst_41 = arith.constant dense<0xFF800000> : vector<64xf32>
    %168 = vector.multi_reduction <maximumf>, %167, %cst_41 [1] : vector<64x24xf32> to vector<64xf32>
    %169 = vector.shape_cast %168 : vector<64xf32> to vector<64x1xf32>
    %170 = vector.broadcast %169 : vector<64x1xf32> to vector<64x24xf32>
    %171 = arith.subf %167, %170 : vector<64x24xf32>
    %172 = math.exp %171 : vector<64x24xf32>
    %cst_42 = arith.constant dense<0.000000e+00> : vector<64xf32>
    %173 = vector.multi_reduction <add>, %172, %cst_42 [1] : vector<64x24xf32> to vector<64xf32>
    %174 = vector.shape_cast %173 : vector<64xf32> to vector<64x1xf32>
    %175 = tpu.reciprocal %174 {approx = true} : vector<64x1xf32> -> vector<64x1xf32>
    %176 = vector.broadcast %175 : vector<64x1xf32> to vector<64x24xf32>
    %177 = arith.mulf %172, %176 : vector<64x24xf32>
    %178 = arith.truncf %177 : vector<64x24xf32> to vector<64x24xbf16>
    %179 = arith.truncf %153 : vector<24x32xf32> to vector<24x32xbf16>
    %cst_43 = arith.constant dense<0.000000e+00> : vector<64x32xf32>
    %180 = tpu.matmul %178, %179, %cst_43 {dimension_numbers = #tpu.dot_dimension_numbers<[1], [0], [0], [1], [0, 0, 1, 1], [], []>} : vector<64x24xbf16>, vector<24x32xbf16>, vector<64x32xf32> -> vector<64x32xf32>
    %181 = vector.shape_cast %180 : vector<64x32xf32> to vector<4x16x32xf32>
    %182 = vector.broadcast %21 : vector<4x1x32xf32> to vector<4x16x32xf32>
    %183 = arith.mulf %181, %182 : vector<4x16x32xf32>
    %cst_44 = arith.constant dense<0.000000e+00> : vector<16x32xf32>
    %184 = vector.multi_reduction <add>, %183, %cst_44 [0] : vector<4x16x32xf32> to vector<16x32xf32>
    %185 = arith.truncf %184 : vector<16x32xf32> to vector<16x32xbf16>
    %186 = vector.extract_strided_slice %3 {offsets = [7, 0, 0], sizes = [1, 32, 32], strides = [1, 1, 1]} : vector<9x32x64xbf16> to vector<1x32x32xbf16>
    %187 = vector.shape_cast %186 : vector<1x32x32xbf16> to vector<32x32xbf16>
    %cst_45 = arith.constant dense<0.000000e+00> : vector<16x32xf32>
    %188 = tpu.matmul %185, %187, %cst_45 {dimension_numbers = #tpu.dot_dimension_numbers<[1], [0], [0], [1], [0, 0, 1, 1], [], []>} : vector<16x32xbf16>, vector<32x32xbf16>, vector<16x32xf32> -> vector<16x32xf32>
    %189 = vector.extract_strided_slice %5 {offsets = [7, 0], sizes = [1, 32], strides = [1, 1]} : vector<16x64xf32> to vector<1x32xf32>
    %190 = vector.broadcast %189 : vector<1x32xf32> to vector<16x32xf32>
    %191 = arith.addf %188, %190 : vector<16x32xf32>
    %192 = arith.addf %191, %133 : vector<16x32xf32>
    %193 = vector.extract_strided_slice %5 {offsets = [12, 0], sizes = [1, 32], strides = [1, 1]} : vector<16x64xf32> to vector<1x32xf32>
    %194 = vector.extract_strided_slice %5 {offsets = [13, 0], sizes = [1, 32], strides = [1, 1]} : vector<16x64xf32> to vector<1x32xf32>
    %cst_46 = arith.constant dense<0.000000e+00> : vector<16xf32>
    %195 = vector.multi_reduction <add>, %192, %cst_46 [1] : vector<16x32xf32> to vector<16xf32>
    %196 = vector.shape_cast %195 : vector<16xf32> to vector<16x1xf32>
    %cst_47 = arith.constant 3.200000e+01 : f32
    %197 = vector.broadcast %cst_47 : f32 to vector<16x1xf32>
    %198 = arith.divf %196, %197 : vector<16x1xf32>
    %199 = vector.broadcast %198 : vector<16x1xf32> to vector<16x32xf32>
    %200 = arith.subf %192, %199 : vector<16x32xf32>
    %201 = arith.mulf %200, %200 : vector<16x32xf32>
    %cst_48 = arith.constant dense<0.000000e+00> : vector<16xf32>
    %202 = vector.multi_reduction <add>, %201, %cst_48 [1] : vector<16x32xf32> to vector<16xf32>
    %203 = vector.shape_cast %202 : vector<16xf32> to vector<16x1xf32>
    %cst_49 = arith.constant 3.200000e+01 : f32
    %204 = vector.broadcast %cst_49 : f32 to vector<16x1xf32>
    %205 = arith.divf %203, %204 : vector<16x1xf32>
    %206 = vector.broadcast %198 : vector<16x1xf32> to vector<16x32xf32>
    %207 = arith.subf %192, %206 : vector<16x32xf32>
    %cst_50 = arith.constant 9.99999974E-6 : f32
    %208 = vector.broadcast %cst_50 : f32 to vector<16x1xf32>
    %209 = arith.addf %205, %208 : vector<16x1xf32>
    %210 = math.rsqrt %209 : vector<16x1xf32>
    %211 = vector.broadcast %210 : vector<16x1xf32> to vector<16x32xf32>
    %212 = arith.mulf %207, %211 : vector<16x32xf32>
    %213 = vector.broadcast %193 : vector<1x32xf32> to vector<16x32xf32>
    %214 = arith.mulf %212, %213 : vector<16x32xf32>
    %215 = vector.broadcast %194 : vector<1x32xf32> to vector<16x32xf32>
    %216 = arith.addf %214, %215 : vector<16x32xf32>
    %217 = arith.truncf %216 : vector<16x32xf32> to vector<16x32xbf16>
    %218 = vector.extract_strided_slice %3 {offsets = [8, 0, 0], sizes = [1, 32, 64], strides = [1, 1, 1]} : vector<9x32x64xbf16> to vector<1x32x64xbf16>
    %219 = vector.shape_cast %218 : vector<1x32x64xbf16> to vector<32x64xbf16>
    %cst_51 = arith.constant dense<0.000000e+00> : vector<16x64xf32>
    %220 = tpu.matmul %217, %219, %cst_51 {dimension_numbers = #tpu.dot_dimension_numbers<[1], [0], [0], [1], [0, 0, 1, 1], [], []>} : vector<16x32xbf16>, vector<32x64xbf16>, vector<16x64xf32> -> vector<16x64xf32>
    %221 = vector.extract_strided_slice %5 {offsets = [8, 0], sizes = [1, 64], strides = [1, 1]} : vector<16x64xf32> to vector<1x64xf32>
    %222 = vector.broadcast %221 : vector<1x64xf32> to vector<16x64xf32>
    %223 = arith.addf %220, %222 : vector<16x64xf32>
    %cst_52 = arith.constant 0.000000e+00 : f32
    %224 = vector.broadcast %cst_52 : f32 to vector<16x64xf32>
    %225 = arith.maximumf %223, %224 : vector<16x64xf32>
    %226 = arith.truncf %225 : vector<16x64xf32> to vector<16x64xbf16>
    %cst_53 = arith.constant dense<0.000000e+00> : vector<16x32xf32>
    %227 = tpu.matmul %226, %4, %cst_53 {dimension_numbers = #tpu.dot_dimension_numbers<[1], [0], [0], [1], [0, 0, 1, 1], [], []>} : vector<16x64xbf16>, vector<64x32xbf16>, vector<16x32xf32> -> vector<16x32xf32>
    %228 = vector.extract_strided_slice %5 {offsets = [9, 0], sizes = [1, 32], strides = [1, 1]} : vector<16x64xf32> to vector<1x32xf32>
    %229 = vector.broadcast %228 : vector<1x32xf32> to vector<16x32xf32>
    %230 = arith.addf %227, %229 : vector<16x32xf32>
    %231 = arith.addf %230, %216 : vector<16x32xf32>
    %232 = vector.extract_strided_slice %5 {offsets = [14, 0], sizes = [1, 32], strides = [1, 1]} : vector<16x64xf32> to vector<1x32xf32>
    %233 = vector.extract_strided_slice %5 {offsets = [15, 0], sizes = [1, 32], strides = [1, 1]} : vector<16x64xf32> to vector<1x32xf32>
    %cst_54 = arith.constant dense<0.000000e+00> : vector<16xf32>
    %234 = vector.multi_reduction <add>, %231, %cst_54 [1] : vector<16x32xf32> to vector<16xf32>
    %235 = vector.shape_cast %234 : vector<16xf32> to vector<16x1xf32>
    %cst_55 = arith.constant 3.200000e+01 : f32
    %236 = vector.broadcast %cst_55 : f32 to vector<16x1xf32>
    %237 = arith.divf %235, %236 : vector<16x1xf32>
    %238 = vector.broadcast %237 : vector<16x1xf32> to vector<16x32xf32>
    %239 = arith.subf %231, %238 : vector<16x32xf32>
    %240 = arith.mulf %239, %239 : vector<16x32xf32>
    %cst_56 = arith.constant dense<0.000000e+00> : vector<16xf32>
    %241 = vector.multi_reduction <add>, %240, %cst_56 [1] : vector<16x32xf32> to vector<16xf32>
    %242 = vector.shape_cast %241 : vector<16xf32> to vector<16x1xf32>
    %cst_57 = arith.constant 3.200000e+01 : f32
    %243 = vector.broadcast %cst_57 : f32 to vector<16x1xf32>
    %244 = arith.divf %242, %243 : vector<16x1xf32>
    %245 = vector.broadcast %237 : vector<16x1xf32> to vector<16x32xf32>
    %246 = arith.subf %231, %245 : vector<16x32xf32>
    %cst_58 = arith.constant 9.99999974E-6 : f32
    %247 = vector.broadcast %cst_58 : f32 to vector<16x1xf32>
    %248 = arith.addf %244, %247 : vector<16x1xf32>
    %249 = math.rsqrt %248 : vector<16x1xf32>
    %250 = vector.broadcast %249 : vector<16x1xf32> to vector<16x32xf32>
    %251 = arith.mulf %246, %250 : vector<16x32xf32>
    %252 = vector.broadcast %232 : vector<1x32xf32> to vector<16x32xf32>
    %253 = arith.mulf %251, %252 : vector<16x32xf32>
    %254 = vector.broadcast %233 : vector<1x32xf32> to vector<16x32xf32>
    %255 = arith.addf %253, %254 : vector<16x32xf32>
    %c0_59 = arith.constant 0 : index
    %c0_60 = arith.constant 0 : index
    %256 = vector.load %arg8[%c0_59, %c0_60] : memref<16x32xf32, #tpu.memory_space<vmem>>, vector<16x32xf32>
    tpu.vector_store %arg8[%c0_59, %c0_60], %255 {strides = array<i32>} : memref<16x32xf32, #tpu.memory_space<vmem>>, vector<16x32xf32>,
    return
  }
  func.func @transform_0(%arg0: i32) -> (i32, i32) {
    %c0_i32 = arith.constant 0 : i32
    %c0_i32_0 = arith.constant 0 : i32
    %c0_i32_1 = arith.constant 0 : i32
    return %c0_i32, %c0_i32_0 : i32, i32
  }
  func.func @transform_1(%arg0: i32) -> (i32, i32) {
    %c0_i32 = arith.constant 0 : i32
    %c0_i32_0 = arith.constant 0 : i32
    %c0_i32_1 = arith.constant 0 : i32
    return %c0_i32, %c0_i32_0 : i32, i32
  }
  func.func @transform_2(%arg0: i32) -> (i32, i32) {
    %c0_i32 = arith.constant 0 : i32
    %c0_i32_0 = arith.constant 0 : i32
    %c0_i32_1 = arith.constant 0 : i32
    return %c0_i32, %c0_i32_0 : i32, i32
  }
  func.func @transform_3(%arg0: i32) -> (i32, i32) {
    %c0_i32 = arith.constant 0 : i32
    %c0_i32_0 = arith.constant 0 : i32
    %c0_i32_1 = arith.constant 0 : i32
    return %c0_i32, %c0_i32_0 : i32, i32
  }
  func.func @transform_4(%arg0: i32) -> (i32, i32, i32) {
    %c0_i32 = arith.constant 0 : i32
    %c0_i32_0 = arith.constant 0 : i32
    %c0_i32_1 = arith.constant 0 : i32
    %c0_i32_2 = arith.constant 0 : i32
    return %c0_i32, %c0_i32_0, %c0_i32_1 : i32, i32, i32
  }
  func.func @transform_5(%arg0: i32) -> (i32, i32) {
    %c0_i32 = arith.constant 0 : i32
    %c0_i32_0 = arith.constant 0 : i32
    %c0_i32_1 = arith.constant 0 : i32
    return %c0_i32, %c0_i32_0 : i32, i32
  }
  func.func @transform_6(%arg0: i32) -> (i32, i32) {
    %c0_i32 = arith.constant 0 : i32
    %c0_i32_0 = arith.constant 0 : i32
    %c0_i32_1 = arith.constant 0 : i32
    return %c0_i32, %c0_i32_0 : i32, i32
  }
  func.func @transform_7(%arg0: i32) -> (i32, i32) {
    %c0_i32 = arith.constant 0 : i32
    %c0_i32_0 = arith.constant 0 : i32
    %c0_i32_1 = arith.constant 0 : i32
    return %c0_i32, %c0_i32_0 : i32, i32
  }
}

</mosaic_0001>

<bundles_post_ra>
// kernel: tpu_custom_call.1
= control target key start
LH: loop header
LB: loop body
LE: loop exit
PB: predicated region body
PF: predicated region fallthrough
CT: control target
= control target key end

     0   :  { %12 = vsyncpa [#allocation3], 0  ;;  %s2337_s0 = inlined_call_operand.vmem [shape: f32[16,32], index: 0, kind: input, shape index: {}]   ;;  %s2338_s1 = inlined_call_operand.vmem [shape: f32[24,32], index: 1, kind: input, shape index: {}]   ;;  %s2339_s2 = inlined_call_operand.vmem [shape: f32[2,24], index: 2, kind: input, shape index: {}]   ;;  %s2340_s3 = inlined_call_operand.vmem [shape: f32[16,1], index: 3, kind: input, shape index: {}]   ;;  %s2341_s4 = inlined_call_operand.hbm [shape: bf16[9,32,64], index: 4, kind: input, shape index: {}]   ;;  %s2342_s5 = inlined_call_operand.vmem [shape: bf16[64,32], index: 5, kind: input, shape index: {}]   ;;  %s2343_s6 = inlined_call_operand.vmem [shape: f32[16,64], index: 6, kind: input, shape index: {}]   ;;  %s2344_s7 = inlined_call_operand.hbm [shape: f32[16,32], index: 7, kind: output, shape index: {}]  }
   0x1   :  { %13 = vsyncpa [#allocation4], 0  ;;  %s1920_s24 = smov [#allocation2]   ;;  %s1872_s28 = scalar_lea.hbm %s2341_s4, 2304 }
   0x2   :  { %s27_s25 = sshll.u32 %s1920_s24, 4  ;;  %p1873_p0 = scmp.ne.s32.totalorder %s2341_s4, %s1872_s28  ;;  %s28_s25 = int_to_ptr.vmem [resolvable:$true] %s27_s25 }
   0x3   :  { %p1876_p1 = scmp.lt.u32.totalorder %s1872_s28, %s2341_s4 }
   0x5   :  { %p1878_p2 = pnand %p1876_p1, %p1873_p0 }
   0x7   :  { %1881 = shalt.err (!%p1878_p2)
}
   0x8   :  { %s1882_s10 = scalar_lea.vmem %s28_s25, 2304  ;;  %p1887_p4 = scmp.lt.s32.totalorder %s28_s25, %s28_s25 }
   0x9   :  { %p1883_p3 = scmp.ne.s32.totalorder %s28_s25, %s1882_s10  ;;  %p1888_p5 = scmp.lt.s32.totalorder %s1882_s10, %s1882_s10 }
   0xb   :  { %p1889_p6 = por %p1888_p5, %p1887_p4 }
   0xd   :  { %p1890_p7 = pnand %p1889_p6, %p1883_p3 }
   0xf   :  { %1893 = shalt.err (!%p1890_p7)
}
  0x10   :  { %s1921_s11 = smov 64   ;;  %s1922_s12 = smov 4  }
  0x11   :  { %33 = dma.hbm_to_vmem [thread:$0]  %s2341_s4, 2304, %s28_s25, [#allocation3], %s1921_s11, %s1921_s11, %s1922_s12  }
  0x12   :  { %1916 = dma.done.wait [#allocation3], 2304  }
  0x13   :  { %1917 = vsyncadd [#allocation3], 4294964992  ;;  %v1923_v0 = vmov 0.0   ;;  %vm1924_vm0 = vmmov 0   ;;  %v1773_v1 = vld [vmem:[#allocation2] sm:$0xff]   ;;  %v1774_v2 = vld [vmem:[#allocation2 + $0x8] sm:$0xff]   ;;  %v93_v8 = vlaneseq }
  0x14   :  { %1629 = vmatprep.subr.bf16.mxu1 %v1923_v0  ;;  %1633 = vmatprep.mubr.msk.bf16.mxu1 %vm1924_vm0, %v1923_v0  ;;  %v1991_v3 = vld [vmem:[%s2337_s0] sm:$0xff]  ;;  %v1996_v4 = vld [vmem:[%s2337_s0 + $0x8] sm:$0xff]  ;;  %vm196_vm1 = vcmask 261120   ;;  %v1775_v5 = vld [vmem:[#allocation2 + $0x10] sm:$0xff]   ;;  %v1925_v14 = vmov 0  }
  0x15   :  { %1645 = vmatprep.subr.bf16.mxu0 %v1923_v0  ;;  %1649 = vmatprep.mubr.msk.bf16.mxu0 %vm1924_vm0, %v1923_v0  ;;  %v2001_v6 = vpack.c.bf16 %v1996_v4, %v1991_v3  ;;  %v1776_v7 = vld [vmem:[#allocation2 + $0x18] sm:$0xff]   ;;  %v2011_v9 = vshrl.u32 %v93_v8, 7  ;;  %v119_v10 = vld [vmem:[%s2340_s3] sm:$0xff]  ;;  %v120_v12 = vld [vmem:[%s2340_s3 + $0x8] sm:$0xff]  ;;  %v2021_v20 = vand.u32 127, %v93_v8 }
  0x16   :  { %1630 = vmatpush3.bf16.msra.mxu1 %v1773_v1  ;;  %1772 = vset.pattern.permute.xlu1 %v1925_v14  ;;  %v126_v15 = vmul.f32 8.0, %v119_v10  ;;  %v127_v16 = vmul.f32 8.0, %v120_v12  ;;  %v2029_v22 = vld [vmem:[%s2343_s6] sm:$0xff]  ;;  %v1926_v55 = vmov -1e+09   ;;  %v1778_v58 = vld [vmem:[#allocation2 + $0x28] sm:$0xff]  }
  0x17   :  { %1631 = vmatprep.subr.bf16.mxu1 %v1923_v0  ;;  %v124_v11 = vcvt.s32.f32 %v2011_v9  ;;  %v123_v13 = vadd.s32 8, %v2011_v9  ;;  %1771 = vset.pattern.permute.xlu0 %v1925_v14  ;;  %v2024_v21 = vsub.s32 0, %v2011_v9  ;;  %vm99_vm2 = vcmp.lt.s32.totalorder %v2021_v20, 8  ;;  %v2085_v53 = vld [vmem:[%s2339_s2 + $0x1] ss:$0 sm:$0xff] }
  0x18   :  { %141 = vperm.xlu0 %1771, %v119_v10   ;;  %v2035_v25 = vsel %vm99_vm2, 1.0, %v1923_v0  ;;  %v243_v31 = vsub.s32 1, %v2011_v9  ;;  %vm96_vm3 = vcmp.ge.s32.totalorder %v2021_v20, 8  ;;  %vm100_vm4 = vcmp.lt.s32.totalorder %v2021_v20, 16  ;;  %v1777_v57 = vld [vmem:[#allocation2 + $0x20] sm:$0xff]  }
  0x19   :  { %v125_v17 = vcvt.s32.f32 %v123_v13  ;;  %v128_v18 = vsub.f32 %v124_v11, %v126_v15  ;;  %v183_v23 = vrot.slane %v2029_v22, %v2024_v21  ;;  %v2040_v32 = vpack.c.bf16 %v2035_v25, %v2035_v25  ;;  %vm104_vm7 = vmand %vm96_vm3, %vm100_vm4  ;;  %1646 = vmatpush3.bf16.msra.mxu0 %v1777_v57  ;;  %v130_v59 = vld [vmem:[%s2339_s2] sm:$0x1] }
  0x1a   :  { %1632 = vmatpush3.bf16.msra.mxu1 %v1774_v2  ;;  %v244_v34 = vrot.slane %v2029_v22, %v243_v31  ;;  %vm97_vm5 = vcmp.ge.s32.totalorder %v2021_v20, 16  ;;  %vm101_vm6 = vcmp.lt.s32.totalorder %v2021_v20, 24  ;;  %v2052_v43 = vsel %vm104_vm7, 1.0, %v1923_v0  ;;  %1647 = vmatprep.subr.bf16.mxu0 %v1923_v0 }
  0x1b   :  { %1637 = vmatprep.subr.bf16.mxu1 %v1923_v0  ;;  %157 = vperm.xlu1 %1772, %v128_v18   ;;  %v129_v19 = vsub.f32 %v125_v17, %v127_v16  ;;  %vm105_vm8 = vmand %vm97_vm5, %vm101_vm6  ;;  %vm98_vm9 = vcmp.ge.s32.totalorder %v2021_v20, 24  ;;  %vm102_vm10 = vcmp.lt.s32.totalorder %v2021_v20, 32  ;;  %v2063_v46 = vpack.c.bf16 %v2052_v43, %v2052_v43 }
  0x1c   :  { %146 = vperm.xlu0 %1771, %v120_v12   ;;  %v2057_v45 = vsel %vm105_vm8, 1.0, %v1923_v0  ;;  %vm106_vm11 = vmand %vm98_vm9, %vm102_vm10  ;;  %v132_v60 = vmul.f32 8.0, %v130_v59  ;;  %v131_v61 = vcvt.s32.f32 %v2021_v20  ;;  %v138_v1 = vrot.slane %v130_v59, %v2024_v21 }
  0x1d   :  { %1634 = vmatmul.mubr.msk.bf16.vlgmr.msra.gmra.mrb[0].mxu1 %vm196_vm1, %v2001_v6  ;;  %v2068_v47 = vpack.c.bf16 %v2057_v45, %v2057_v45  ;;  %v2073_v50 = vsel %vm106_vm11, 1.0, %v1923_v0  ;;  %1648 = vmatpush3.bf16.msra.mxu0 %v1778_v58  ;;  %vm441_vm5 = vcmask 130048   ;;  %vm1023_vm7 = vcmask 195584  }
  0x1e   :  { %1638 = vmatpush3.bf16.msra.mxu1 %v1775_v5  ;;  %1641 = vmatprep.mubr.msk.bf16.mxu1 %vm1924_vm0, %v1923_v0  ;;  %v2079_v51 = vpack.c.bf16 %v2073_v50, %v2073_v50  ;;  %v133_v62 = vsub.f32 %v131_v61, %v132_v60  ;;  %vm1130_vm8 = vcmask 1043456  }
  0x1f   :  { %1639 = vmatprep.subr.bf16.mxu1 %v1923_v0  ;;  %162 = vperm.xlu1 %1772, %v129_v19  }
  0x20   :  { %1650 = vmatmul.mubr.msk.bf16.vlgmr.msra.gmra.mrb[0].mxu0 %vm196_vm1, %v2001_v6  ;;  %v154_v2 = vrot.slane %v133_v62, %v2024_v21 }
  0x22   :  { %1640 = vmatpush3.bf16.msra.mxu1 %v1776_v7 }
  0x25   :  { %1642 = vmatmul.mubr.msk.bf16.vlgmr.msra.gmra.mrb[4].mxu1 %vm196_vm1, %v2001_v6 }
  0x97   :  { %v142_v54 = vpop.permute.xlu0 %141 }
  0x98   :  { %vm175_vm12 = vcmp.eq.f32.partialorder %v2085_v53, %v142_v54  ;;  %vm149_vm13 = vcmp.eq.f32.partialorder %v138_v1, %v142_v54 }
  0x99   :  { %v2092_v56 = vsel %vm175_vm12, 0.0, %v1926_v55 }
  0x9a   :  { %v158_v63 = vpop.permute.xlu1 %157 }
  0x9b   :  { %v2103_v5 = vpop.permute.xlu0 %146  ;;  %vm165_vm14 = vcmp.le.f32.partialorder %v154_v2, %v158_v63 }
  0x9c   :  { %vm150_vm15 = vcmp.eq.f32.partialorder %v138_v1, %v2103_v5  ;;  %vm167_vm3 = vmand %vm149_vm13, %vm165_vm14  ;;  %vm176_vm6 = vcmp.eq.f32.partialorder %v2085_v53, %v2103_v5 }
  0x9d   :  { %v169_v6 = vsel %vm167_vm3, 0.0, %v1926_v55 }
  0x9e   :  { %v163_v7 = vpop.permute.xlu1 %162 }
  0x9f   :  { %vm166_vm2 = vcmp.le.f32.partialorder %v154_v2, %v163_v7 }
  0xa0   :  { %vm168_vm4 = vmand %vm150_vm15, %vm166_vm2 }
  0xa1   :  { %v170_v8 = vsel %vm168_vm4, 0.0, %v1926_v55 }
  0xf0   :  { %v234_v24 = vpop.f32.mrb[0].mxu1 }
  0xf1   :  { %v1635_v26 = vpop.f32.mrb[1].mxu1  ;;  %v235_v28 = vadd.f32 %v234_v24, %v183_v23 }
  0xf2   :  { %v237_v27 = vpop.f32.mrb[2].mxu1 }
  0xf3   :  { %v238_v29 = vadd.f32 %v237_v27, %v183_v23  ;;  %v1636_v30 = vpop.f32.mrb[3].mxu1 }
  0xf5   :  { %v355_v33 = vpack.c.bf16 %v238_v29, %v235_v28 }
  0xf7   :  { %v356_v35 = vmul.bf16 %v355_v33, %v2040_v32  ;;  %v357_v48 = vmul.bf16 %v355_v33, %v2063_v46  ;;  %v358_v49 = vmul.bf16 %v355_v33, %v2068_v47  ;;  %v359_v52 = vmul.bf16 %v355_v33, %v2079_v51 }
  0xf8   :  { %v291_v36 = vpop.f32.mrb[4].mxu1 }
  0xf9   :  { %v1643_v37 = vpop.f32.mrb[5].mxu1  ;;  %1655 = vmatprep.mubr.msk.bf16.mxu1 %vm196_vm1, %v356_v35  ;;  %v292_v39 = vadd.f32 %v291_v36, %v244_v34 }
  0xfa   :  { %v294_v38 = vpop.f32.mrb[6].mxu1 }
  0xfb   :  { %v295_v40 = vadd.f32 %v294_v38, %v244_v34  ;;  %v1644_v41 = vpop.f32.mrb[7].mxu1 }
  0xfd   :  { %v360_v42 = vpack.c.bf16 %v295_v40, %v292_v39 }
  0xff   :  { %1757 = vmatprep.subr.msk.bf16.mxu1 %vm196_vm1, %v360_v42  ;;  %v374_v44 = vsel %vm196_vm1, %v360_v42, 0 }
 0x100   :  { %1654 = vmatpush3.bf16.xpose.msra.mxu1 %v374_v44 }
 0x101   :  { %1673 = vmatprep.subr.bf16.mxu1 %v1923_v0 }
 0x107   :  { %1656 = vmatmul.mubr.msk.bf16.vlgmr.msra.gmra.mrb[8].mxu1 %vm196_vm1, %v357_v48 }
 0x108   :  { %1659 = vmatprep.mubr.msk.bf16.mxu1 %vm196_vm1, %v358_v49 }
 0x10f   :  { %1660 = vmatmul.mubr.msk.bf16.gmra.mrb[12].mxu1 %vm196_vm1, %v359_v52 }
 0x110   :  { %1677 = vmatprep.mubr.msk.bf16.mxu1 %vm1924_vm0, %v1923_v0 }
 0x1da   :  { %v1657_v10 = vpop.f32.mrb[8].mxu1 }
 0x1db   :  { %v419_v11 = vadd.f32 %v1657_v10, %v169_v6  ;;  %v410_v12 = vpop.f32.mrb[9].mxu1 }
 0x1dc   :  { %v411_v13 = vadd.f32 %v410_v12, %v169_v6  ;;  %v1658_v14 = vpop.f32.mrb[10].mxu1 }
 0x1dd   :  { %v422_v15 = vadd.f32 %v1658_v14, %v170_v8  ;;  %v413_v16 = vpop.f32.mrb[11].mxu1  ;;  %v448_v23 = vsel %vm441_vm5, %v419_v11, -inf }
 0x1de   :  { %v414_v17 = vadd.f32 %v413_v16, %v170_v8  ;;  %v442_v18 = vsel %vm441_vm5, %v411_v13, -inf }
 0x1df   :  { %443 = vmax.xlane.f32.xlu0 %v442_v18  ;;  %v451_v35 = vsel %vm441_vm5, %v422_v15, -inf }
 0x1e0   :  { %v445_v19 = vsel %vm441_vm5, %v414_v17, -inf }
 0x1e1   :  { %446 = vmax.xlane.f32.xlu1 %v445_v19 }
 0x1e2   :  { %v1661_v20 = vpop.f32.mrb[12].mxu1 }
 0x1e3   :  { %v435_v24 = vadd.f32 %v1661_v20, %v169_v6  ;;  %v426_v26 = vpop.f32.mrb[13].mxu1  ;;  %449 = vmax.xlane.f32.xlu0 %v448_v23 }
 0x1e4   :  { %v427_v27 = vadd.f32 %v426_v26, %v169_v6  ;;  %v1662_v28 = vpop.f32.mrb[14].mxu1 }
 0x1e5   :  { %v438_v29 = vadd.f32 %v1662_v28, %v170_v8  ;;  %v429_v30 = vpop.f32.mrb[15].mxu1  ;;  %v460_v36 = vsel %vm441_vm5, %v435_v24, -inf }
 0x1e6   :  { %v430_v33 = vadd.f32 %v429_v30, %v170_v8  ;;  %v454_v34 = vsel %vm441_vm5, %v427_v27, -inf }
 0x1e7   :  { %455 = vmax.xlane.f32.xlu1 %v454_v34  ;;  %452 = vmax.xlane.f32.xlu0 %v451_v35  ;;  %v463_v38 = vsel %vm441_vm5, %v438_v29, -inf  ;;  %v300_v34 = vsub.s32 2, %v2011_v9  ;;  %v348_v35 = vpop.f32.mrb[0].mxu0 }
 0x1e8   :  { %v457_v37 = vsel %vm441_vm5, %v430_v33, -inf }
 0x1eb   :  { %461 = vmax.xlane.f32.xlu1 %v460_v36  ;;  %458 = vmax.xlane.f32.xlu0 %v457_v37  ;;  %v301_v36 = vrot.slane %v2029_v22, %v300_v34  ;;  %v1651_v37 = vpop.f32.mrb[1].mxu0 }
 0x1ef   :  { %464 = vmax.xlane.f32.xlu0 %v463_v38  ;;  %v351_v38 = vpop.f32.mrb[2].mxu0 }
 0x26c   :  { %v444_v39 = vpop.xlane.xlu0 %443 }
 0x26d   :  { %v466_v40 = vsub.f32 %v411_v13, %v444_v39  ;;  %v349_v39 = vadd.f32 %v348_v35, %v301_v36 }
 0x26e   :  { %v447_v41 = vpop.xlane.xlu1 %446 }
 0x26f   :  { %v474_v42 = vmul.f32 1.442695, %v466_v40  ;;  %v467_v44 = vsub.f32 %v414_v17, %v447_v41  ;;  %v352_v40 = vadd.f32 %v351_v38, %v301_v36  ;;  %v1652_v41 = vpop.f32.mrb[3].mxu0 }
 0x270   :  { %v450_v48 = vpop.xlane.xlu0 %449 }
 0x271   :  { %1795 = vpow2.f32 %v474_v42  ;;  %v476_v49 = vmul.f32 1.442695, %v467_v44  ;;  %v468_v52 = vsub.f32 %v419_v11, %v450_v48  ;;  %v534_v42 = vpack.c.bf16 %v352_v40, %v349_v39 }
 0x273   :  { %1797 = vpow2.f32 %v476_v49  ;;  %v478_v54 = vmul.f32 1.442695, %v468_v52  ;;  %1663 = vmatprep.subr.bf16.mxu0 %v534_v42 }
 0x274   :  { %v456_v57 = vpop.xlane.xlu1 %455  ;;  %v453_v58 = vpop.xlane.xlu0 %452  ;;  %1664 = vmatpush3.bf16.msra.mxu0 %v534_v42 }
 0x275   :  { %1799 = vpow2.f32 %v478_v54  ;;  %v470_v59 = vsub.f32 %v427_v27, %v456_v57  ;;  %v469_v60 = vsub.f32 %v422_v15, %v453_v58  ;;  %1681 = vmatprep.subr.bf16.mxu0 %v1923_v0 }
 0x277   :  { %v482_v61 = vmul.f32 1.442695, %v470_v59  ;;  %v480_v62 = vmul.f32 1.442695, %v469_v60 }
 0x278   :  { %v462_v63 = vpop.xlane.xlu1 %461  ;;  %v459_v1 = vpop.xlane.xlu0 %458 }
 0x279   :  { %1801 = vpow2.f32 %v482_v61  ;;  %v472_v2 = vsub.f32 %v435_v24, %v462_v63  ;;  %v471_v7 = vsub.f32 %v430_v33, %v459_v1 }
 0x27a   :  { %1803 = vpow2.f32 %v480_v62 }
 0x27b   :  { %v1796_v6 = vpop.eup %1795  ;;  %v486_v8 = vmul.f32 1.442695, %v472_v2  ;;  %v484_v10 = vmul.f32 1.442695, %v471_v7 }
 0x27c   :  { %v465_v12 = vpop.xlane.xlu0 %464  ;;  %v490_v11 = vsel %vm441_vm5, %v1796_v6, 0.0 }
 0x27d   :  { %v1798_v13 = vpop.eup %1797  ;;  %1805 = vpow2.f32 %v486_v8  ;;  %v473_v14 = vsub.f32 %v438_v29, %v465_v12  ;;  %491 = vadd.xlane.f32.xlu1 %v490_v11 }
 0x27e   :  { %1807 = vpow2.f32 %v484_v10  ;;  %v493_v15 = vsel %vm441_vm5, %v1798_v13, 0.0 }
 0x27f   :  { %v1800_v16 = vpop.eup %1799  ;;  %v488_v17 = vmul.f32 1.442695, %v473_v14  ;;  %494 = vadd.xlane.f32.xlu0 %v493_v15 }
 0x280   :  { %v496_v18 = vsel %vm441_vm5, %v1800_v16, 0.0 }
 0x281   :  { %1809 = vpow2.f32 %v488_v17  ;;  %497 = vadd.xlane.f32.xlu1 %v496_v18 }
 0x283   :  { %v1802_v19 = vpop.eup %1801 }
 0x284   :  { %v1804_v20 = vpop.eup %1803  ;;  %v502_v23 = vsel %vm441_vm5, %v1802_v19, 0.0 }
 0x285   :  { %503 = vadd.xlane.f32.xlu1 %v502_v23  ;;  %v499_v24 = vsel %vm441_vm5, %v1804_v20, 0.0 }
 0x286   :  { %500 = vadd.xlane.f32.xlu0 %v499_v24 }
 0x287   :  { %v1806_v26 = vpop.eup %1805 }
 0x288   :  { %v1808_v27 = vpop.eup %1807  ;;  %v508_v28 = vsel %vm441_vm5, %v1806_v26, 0.0 }
 0x289   :  { %509 = vadd.xlane.f32.xlu1 %v508_v28  ;;  %v505_v29 = vsel %vm441_vm5, %v1808_v27, 0.0 }
 0x28a   :  { %506 = vadd.xlane.f32.xlu0 %v505_v29 }
 0x28b   :  { %v1810_v30 = vpop.eup %1809 }
 0x28c   :  { %v511_v33 = vsel %vm441_vm5, %v1810_v30, 0.0 }
 0x28e   :  { %512 = vadd.xlane.f32.xlu0 %v511_v33 }
 0x30a   :  { %v492_v44 = vpop.xlane.xlu1 %491 }
 0x30b   :  { %1811 = vrcp.f32 %v492_v44 }
 0x30c   :  { %v495_v48 = vpop.xlane.xlu0 %494 }
 0x30d   :  { %1813 = vrcp.f32 %v495_v48 }
 0x30e   :  { %v498_v49 = vpop.xlane.xlu1 %497 }
 0x30f   :  { %1815 = vrcp.f32 %v498_v49 }
 0x312   :  { %v504_v52 = vpop.xlane.xlu1 %503 }
 0x313   :  { %v501_v54 = vpop.xlane.xlu0 %500 }
 0x314   :  { %1817 = vrcp.f32 %v501_v54 }
 0x315   :  { %v1812_v57 = vpop.eup %1811  ;;  %1819 = vrcp.f32 %v504_v52 }
 0x316   :  { %v510_v59 = vpop.xlane.xlu1 %509  ;;  %v522_v61 = vmul.f32 %v1812_v57, %v1796_v6 }
 0x317   :  { %v1814_v58 = vpop.eup %1813  ;;  %v507_v60 = vpop.xlane.xlu0 %506 }
 0x318   :  { %1821 = vrcp.f32 %v507_v60  ;;  %v523_v62 = vmul.f32 %v1814_v58, %v1798_v13 }
 0x319   :  { %1823 = vrcp.f32 %v510_v59  ;;  %v1816_v2 = vpop.eup %1815 }
 0x31a   :  { %v530_v63 = vpack.c.bf16 %v523_v62, %v522_v61  ;;  %v524_v8 = vmul.f32 %v1816_v2, %v1800_v16  ;;  %v1779_v16 = vld [vmem:[#allocation2 + $0x30] sm:$0xff]  }
 0x31b   :  { %v513_v1 = vpop.xlane.xlu0 %512  ;;  %1674 = vmatpush3.bf16.msra.mxu1 %v1779_v16 }
 0x31c   :  { %1825 = vrcp.f32 %v513_v1  ;;  %1665 = vmatprep.mubr.msk.bf16.mxu0 %vm441_vm5, %v530_v63  ;;  %1675 = vmatprep.subr.bf16.mxu1 %v1923_v0 }
 0x31e   :  { %v1818_v7 = vpop.eup %1817 }
 0x31f   :  { %v525_v10 = vmul.f32 %v1818_v7, %v1804_v20  ;;  %v1820_v12 = vpop.eup %1819  ;;  %v1780_v20 = vld [vmem:[#allocation2 + $0x38] sm:$0xff]  }
 0x320   :  { %v526_v15 = vmul.f32 %v1820_v12, %v1802_v19  ;;  %1676 = vmatpush3.bf16.msra.mxu1 %v1780_v20  ;;  %v637_v12 = vsub.s32 3, %v2011_v9  ;;  %v1781_v20 = vld [vmem:[#allocation2 + $0x50] sm:$0xff]  }
 0x321   :  { %v531_v11 = vpack.c.bf16 %v525_v10, %v524_v8  ;;  %1689 = vmatprep.subr.bf16.mxu1 %v1781_v20 }
 0x322   :  { %v1822_v14 = vpop.eup %1821 }
 0x323   :  { %1666 = vmatmul.mubr.msk.bf16.vlgmr.msra.gmra.mrb[4].mxu0 %vm441_vm5, %v531_v11  ;;  %v527_v17 = vmul.f32 %v1822_v14, %v1808_v27  ;;  %v1824_v18 = vpop.eup %1823  ;;  %v638_v11 = vrot.slane %v2029_v22, %v637_v12 }
 0x324   :  { %v528_v23 = vmul.f32 %v1824_v18, %v1806_v26 }
 0x325   :  { %v532_v6 = vpack.c.bf16 %v527_v17, %v526_v15 }
 0x326   :  { %v1826_v13 = vpop.eup %1825 }
 0x327   :  { %1669 = vmatprep.mubr.msk.bf16.mxu0 %vm441_vm5, %v532_v6  ;;  %v529_v24 = vmul.f32 %v1826_v13, %v1810_v30 }
 0x329   :  { %v533_v28 = vpack.c.bf16 %v529_v24, %v528_v23 }
 0x32b   :  { %1670 = vmatmul.mubr.msk.bf16.gmra.mrb[8].mxu0 %vm441_vm5, %v533_v28 }
 0x32c   :  { %1685 = vmatprep.mubr.msk.bf16.mxu0 %vm1924_vm0, %v1923_v0 }
 0x3f6   :  { %v1667_v19 = vpop.f32.mrb[4].mxu0 }
 0x3f7   :  { %v614_v27 = vmul.f32 %v1667_v19, %v2052_v43  ;;  %v581_v29 = vpop.f32.mrb[5].mxu0  ;;  %v1782_v19 = vld [vmem:[#allocation2 + $0x58] sm:$0xff]  }
 0x3f8   :  { %v612_v33 = vmul.f32 %v2035_v25, %v581_v29  ;;  %v1668_v26 = vpop.f32.mrb[6].mxu0 }
 0x3f9   :  { %v621_v30 = vsel %vm196_vm1, %v614_v27, 0.0  ;;  %v615_v35 = vmul.f32 %v1668_v26, %v2052_v43  ;;  %v584_v36 = vpop.f32.mrb[7].mxu0 }
 0x3fa   :  { %v620_v37 = vsel %vm196_vm1, %v612_v33, 0.0  ;;  %v613_v38 = vmul.f32 %v2035_v25, %v584_v36 }
 0x3fb   :  { %v622_v39 = vadd.f32 %v621_v30, %v620_v37  ;;  %v628_v40 = vsel %vm196_vm1, %v615_v35, 0.0 }
 0x3fc   :  { %v627_v41 = vsel %vm196_vm1, %v613_v38, 0.0  ;;  %v44_v38 = vld [vmem:[%s2338_s1] sm:$0xff] }
 0x3fd   :  { %v629_v42 = vadd.f32 %v628_v40, %v627_v41  ;;  %v46_v41 = vld [vmem:[%s2338_s1 + $0x10] sm:$0xff] }
 0x3fe   :  { %v1671_v44 = vpop.f32.mrb[8].mxu0 }
 0x3ff   :  { %v597_v48 = vpop.f32.mrb[9].mxu0  ;;  %v618_v49 = vmul.f32 %v1671_v44, %v2073_v50  ;;  %v1783_v44 = vld [vmem:[#allocation2 + $0x40] sm:$0xff]  }
 0x400   :  { %v616_v52 = vmul.f32 %v2057_v45, %v597_v48  ;;  %v1672_v54 = vpop.f32.mrb[10].mxu0  ;;  %1682 = vmatpush3.bf16.msra.mxu0 %v1783_v44  ;;  %v1784_v48 = vld [vmem:[#allocation2 + $0x48] sm:$0xff]   ;;  %v1785_v44 = vld [vmem:[#allocation2 + $0x60] sm:$0xff]  }
 0x401   :  { %v600_v57 = vpop.f32.mrb[11].mxu0  ;;  %v619_v59 = vmul.f32 %v1672_v54, %v2073_v50  ;;  %v625_v62 = vsel %vm196_vm1, %v618_v49, 0.0  ;;  %1683 = vmatprep.subr.bf16.mxu0 %v1923_v0 }
 0x402   :  { %v623_v58 = vsel %vm196_vm1, %v616_v52, 0.0  ;;  %v617_v60 = vmul.f32 %v2057_v45, %v600_v57 }
 0x403   :  { %v624_v61 = vadd.f32 %v623_v58, %v622_v39  ;;  %v632_v7 = vsel %vm196_vm1, %v619_v59, 0.0  ;;  %v45_v39 = vld [vmem:[%s2338_s1 + $0x8] sm:$0xff] }
 0x404   :  { %v630_v63 = vsel %vm196_vm1, %v617_v60, 0.0  ;;  %v737_v40 = vpack.c.bf16 %v45_v39, %v44_v38  ;;  %1684 = vmatpush3.bf16.msra.mxu0 %v1784_v48  ;;  %v2179_v60 = vld [vmem:[%s2343_s6 + $0x8] sm:$0xff] }
 0x405   :  { %v626_v1 = vadd.f32 %v625_v62, %v624_v61  ;;  %v631_v2 = vadd.f32 %v630_v63, %v629_v42  ;;  %v2170_v42 = vpack.c.bf16 %v46_v41, %v46_v41  ;;  %v727_v61 = vrot.slane %v2179_v60, %v300_v34  ;;  %v1786_v48 = vld [vmem:[#allocation2 + $0x68] sm:$0xff]   ;;  %1697 = vmatprep.subr.bf16.mxu0 %v1785_v44 }
 0x406   :  { %v801_v34 = vsub.s32 5, %v2011_v9 }
 0x407   :  { %v633_v8 = vadd.f32 %v632_v7, %v631_v2  ;;  %v733_v2 = vrot.slane %v2179_v60, %v637_v12 }
 0x408   :  { %v802_v12 = vrot.slane %v2029_v22, %v801_v34 }
 0x409   :  { %v634_v10 = vpack.c.bf16 %v633_v8, %v626_v1 }
 0x40b   :  { %1678 = vmatmul.mubr.msk.bf16.vlgmr.msra.gmra.mrb[16].mxu1 %vm196_vm1, %v634_v10 }
 0x40c   :  { %1690 = vmatpush3.bf16.msra.mxu1 %v1781_v20  ;;  %1693 = vmatprep.mubr.msk.bf16.mxu1 %vm196_vm1, %v737_v40 }
 0x40d   :  { %1691 = vmatprep.subr.bf16.mxu1 %v1782_v19 }
 0x410   :  { %1692 = vmatpush3.bf16.msra.mxu1 %v1782_v19 }
 0x413   :  { %1694 = vmatmul.mubr.msk.bf16.vlgmr.msra.gmra.mrb[20].mxu1 %vm196_vm1, %v2170_v42 }
 0x4de   :  { %v688_v14 = vpop.f32.mrb[16].mxu1 }
 0x4df   :  { %v689_v15 = vadd.f32 %v688_v14, %v638_v11  ;;  %v1679_v17 = vpop.f32.mrb[17].mxu1 }
 0x4e0   :  { %v691_v18 = vpop.f32.mrb[18].mxu1 }
 0x4e1   :  { %v692_v6 = vadd.f32 %v691_v18, %v638_v11  ;;  %v1680_v13 = vpop.f32.mrb[19].mxu1  ;;  %v695_v23 = vadd.f32 %v689_v15, %v1991_v3 }
 0x4e3   :  { %v697_v24 = vsel %vm196_vm1, %v695_v23, 0.0  ;;  %v696_v28 = vadd.f32 %v692_v6, %v1996_v4 }
 0x4e4   :  { %698 = vadd.xlane.f32.xlu1 %v697_v24 }
 0x4e5   :  { %v700_v16 = vsel %vm196_vm1, %v696_v28, 0.0 }
 0x4e6   :  { %701 = vadd.xlane.f32.xlu0 %v700_v16  ;;  %v1695_v17 = vpop.f32.mrb[20].mxu1 }
 0x4e7   :  { %v855_v18 = vpop.f32.mrb[21].mxu1  ;;  %v864_v6 = vadd.f32 %v1695_v17, %v802_v12 }
 0x4e8   :  { %v856_v13 = vadd.f32 %v855_v18, %v802_v12 }
 0x4e9   :  { %v939_v16 = vpack.c.bf16 %v864_v6, %v864_v6 }
 0x571   :  { %v699_v27 = vpop.xlane.xlu1 %698 }
 0x572   :  { %v704_v29 = vmul.f32 0.03125, %v699_v27  ;;  %v956_v27 = vsel %vm196_vm1, %v939_v16, 0 }
 0x573   :  { %v702_v33 = vpop.xlane.xlu0 %701 }
 0x574   :  { %v706_v26 = vsub.f32 %v695_v23, %v704_v29  ;;  %v705_v30 = vmul.f32 0.03125, %v702_v33  ;;  %v1696_v23 = vpop.f32.mrb[22].mxu1  ;;  %v741_v29 = vsub.s32 4, %v2011_v9 }
 0x575   :  { %v858_v24 = vpop.f32.mrb[23].mxu1 }
 0x576   :  { %v707_v3 = vsub.f32 %v696_v28, %v705_v30  ;;  %v708_v35 = vmul.f32 %v706_v26, %v706_v26  ;;  %v859_v28 = vadd.f32 %v858_v24, %v802_v12  ;;  %v742_v33 = vrot.slane %v2029_v22, %v741_v29 }
 0x578   :  { %v710_v36 = vsel %vm196_vm1, %v708_v35, 0.0  ;;  %v709_v4 = vmul.f32 %v707_v3, %v707_v3  ;;  %v938_v20 = vpack.c.bf16 %v859_v28, %v856_v13 }
 0x579   :  { %711 = vadd.xlane.f32.xlu1 %v710_v36 }
 0x57a   :  { %v713_v37 = vsel %vm196_vm1, %v709_v4, 0.0  ;;  %1758 = vmatprep.subr.msk.bf16.mxu1 %vm196_vm1, %v938_v20  ;;  %v953_v19 = vsel %vm196_vm1, %v938_v20, 0 }
 0x57b   :  { %714 = vadd.xlane.f32.xlu0 %v713_v37  ;;  %1706 = vmatpush3.bf16.xpose.msra.mxu1 %v953_v19 }
 0x57c   :  { %1759 = vmatprep.subr.msk.bf16.mxu1 %vm196_vm1, %v939_v16 }
 0x583   :  { %1708 = vmatpush3.bf16.xpose.msra.mxu1 %v956_v27 }
 0x584   :  { %1737 = vmatprep.subr.bf16.mxu1 %v1923_v0 }
 0x606   :  { %v712_v49 = vpop.xlane.xlu1 %711 }
 0x607   :  { %v716_v52 = vmul.f32 0.03125, %v712_v49 }
 0x608   :  { %v715_v54 = vpop.xlane.xlu0 %714 }
 0x609   :  { %v718_v57 = vadd.f32 1e-05, %v716_v52  ;;  %v717_v58 = vmul.f32 0.03125, %v715_v54 }
 0x60b   :  { %1827 = vrsqrt.f32 %v718_v57  ;;  %v719_v59 = vadd.f32 1e-05, %v717_v58 }
 0x60d   :  { %1829 = vrsqrt.f32 %v719_v59 }
 0x615   :  { %v1828_v62 = vpop.eup %1827 }
 0x616   :  { %v722_v63 = vmul.f32 %v1828_v62, %v706_v26 }
 0x617   :  { %v1830_v1 = vpop.eup %1829 }
 0x618   :  { %v728_v7 = vmul.f32 %v727_v61, %v722_v63  ;;  %v723_v8 = vmul.f32 %v1830_v1, %v707_v3 }
 0x61a   :  { %v729_v10 = vmul.f32 %v727_v61, %v723_v8  ;;  %v2185_v11 = vadd.f32 %v733_v2, %v728_v7 }
 0x61c   :  { %v2187_v14 = vadd.f32 %v733_v2, %v729_v10 }
 0x61e   :  { %v736_v15 = vpack.c.bf16 %v2187_v14, %v2185_v11 }
 0x620   :  { %1686 = vmatmul.mubr.msk.bf16.vlgmr.msra.gmra.mrb[12].mxu0 %vm196_vm1, %v736_v15 }
 0x621   :  { %1701 = vmatprep.mubr.msk.bf16.mxu0 %vm196_vm1, %v737_v40  ;;  %1698 = vmatpush3.bf16.msra.mxu0 %v1785_v44 }
 0x622   :  { %1699 = vmatprep.subr.bf16.mxu0 %v1786_v48 }
 0x625   :  { %1700 = vmatpush3.bf16.msra.mxu0 %v1786_v48 }
 0x628   :  { %1702 = vmatmul.mubr.msk.bf16.vlgmr.msra.gmra.mrb[16].mxu0 %vm196_vm1, %v2170_v42 }
 0x6f3   :  { %v792_v26 = vpop.f32.mrb[12].mxu0 }
 0x6f4   :  { %v1687_v30 = vpop.f32.mrb[13].mxu0  ;;  %v793_v35 = vadd.f32 %v792_v26, %v742_v33 }
 0x6f5   :  { %v795_v3 = vpop.f32.mrb[14].mxu0 }
 0x6f6   :  { %v796_v36 = vadd.f32 %v795_v3, %v742_v33  ;;  %v1688_v4 = vpop.f32.mrb[15].mxu0 }
 0x6f8   :  { %v933_v37 = vpack.c.bf16 %v796_v36, %v793_v35 }
 0x6fa   :  { %v935_v38 = vmul.bf16 %v933_v37, %v2063_v46  ;;  %v934_v39 = vmul.bf16 %v933_v37, %v2040_v32  ;;  %v936_v40 = vmul.bf16 %v933_v37, %v2068_v47  ;;  %v937_v41 = vmul.bf16 %v933_v37, %v2079_v51 }
 0x6fb   :  { %v178_v51 = vsel %vm176_vm6, 0.0, %v1926_v55 }
 0x6fc   :  { %1709 = vmatprep.mubr.msk.bf16.mxu1 %vm196_vm1, %v934_v39 }
 0x6fd   :  { %1710 = vmatmul.mubr.msk.bf16.vlgmr.msra.gmra.mrb[24].mxu1 %vm196_vm1, %v935_v38 }
 0x6fe   :  { %1713 = vmatprep.mubr.msk.bf16.mxu1 %vm196_vm1, %v936_v40 }
 0x705   :  { %1714 = vmatmul.mubr.msk.bf16.gmra.mrb[28].mxu1 %vm196_vm1, %v937_v41 }
 0x706   :  { %1741 = vmatprep.mubr.msk.bf16.mxu1 %vm1924_vm0, %v1923_v0 }
 0x7d0   :  { %v1711_v32 = vpop.f32.mrb[24].mxu1 }
 0x7d1   :  { %v1001_v46 = vadd.f32 %v1711_v32, %v2092_v56  ;;  %v992_v47 = vpop.f32.mrb[25].mxu1 }
 0x7d2   :  { %v993_v49 = vadd.f32 %v992_v47, %v2092_v56  ;;  %v1712_v52 = vpop.f32.mrb[26].mxu1 }
 0x7d3   :  { %v1004_v54 = vadd.f32 %v1712_v52, %v178_v51  ;;  %v995_v57 = vpop.f32.mrb[27].mxu1  ;;  %v1030_v5 = vsel %vm1023_vm7, %v1001_v46, -inf }
 0x7d4   :  { %v996_v58 = vadd.f32 %v995_v57, %v178_v51  ;;  %v1024_v59 = vsel %vm1023_vm7, %v993_v49, -inf }
 0x7d5   :  { %1025 = vmax.xlane.f32.xlu1 %v1024_v59  ;;  %v1033_v1 = vsel %vm1023_vm7, %v1004_v54, -inf }
 0x7d6   :  { %v1027_v42 = vsel %vm1023_vm7, %v996_v58, -inf }
 0x7d7   :  { %1028 = vmax.xlane.f32.xlu0 %v1027_v42  ;;  %v871_v42 = vsub.s32 6, %v2011_v9 }
 0x7d8   :  { %v1715_v53 = vpop.f32.mrb[28].mxu1 }
 0x7d9   :  { %v1017_v61 = vadd.f32 %v1715_v53, %v2092_v56  ;;  %v1008_v62 = vpop.f32.mrb[29].mxu1  ;;  %1031 = vmax.xlane.f32.xlu1 %v1030_v5 }
 0x7da   :  { %v1009_v55 = vadd.f32 %v1008_v62, %v2092_v56  ;;  %v1716_v63 = vpop.f32.mrb[30].mxu1  ;;  %v1703_v56 = vpop.f32.mrb[16].mxu0 }
 0x7db   :  { %v1020_v2 = vadd.f32 %v1716_v63, %v178_v51  ;;  %v1011_v7 = vpop.f32.mrb[31].mxu1  ;;  %1034 = vmax.xlane.f32.xlu0 %v1033_v1  ;;  %v1042_v12 = vsel %vm1023_vm7, %v1017_v61, -inf  ;;  %v919_v18 = vpop.f32.mrb[17].mxu0 }
 0x7dc   :  { %v1012_v8 = vadd.f32 %v1011_v7, %v178_v51  ;;  %v1036_v10 = vsel %vm1023_vm7, %v1009_v55, -inf  ;;  %v1704_v6 = vpop.f32.mrb[18].mxu0 }
 0x7dd   :  { %1037 = vmax.xlane.f32.xlu1 %v1036_v10  ;;  %v1045_v17 = vsel %vm1023_vm7, %v1020_v2, -inf }
 0x7de   :  { %v1039_v15 = vsel %vm1023_vm7, %v1012_v8, -inf }
 0x7df   :  { %1040 = vmax.xlane.f32.xlu0 %v1039_v15  ;;  %v922_v15 = vpop.f32.mrb[19].mxu0 }
 0x7e1   :  { %1043 = vmax.xlane.f32.xlu1 %v1042_v12 }
 0x7e3   :  { %1046 = vmax.xlane.f32.xlu0 %v1045_v17 }
 0x862   :  { %v1026_v13 = vpop.xlane.xlu1 %1025 }
 0x863   :  { %v1048_v23 = vsub.f32 %v993_v49, %v1026_v13 }
 0x864   :  { %v1029_v24 = vpop.xlane.xlu0 %1028 }
 0x865   :  { %v1056_v28 = vmul.f32 1.442695, %v1048_v23  ;;  %v1049_v16 = vsub.f32 %v996_v58, %v1029_v24 }
 0x866   :  { %v1032_v20 = vpop.xlane.xlu1 %1031 }
 0x867   :  { %1831 = vpow2.f32 %v1056_v28  ;;  %v1058_v19 = vmul.f32 1.442695, %v1049_v16  ;;  %v1050_v27 = vsub.f32 %v1001_v46, %v1032_v20 }
 0x868   :  { %v1035_v33 = vpop.xlane.xlu0 %1034 }
 0x869   :  { %1833 = vpow2.f32 %v1058_v19  ;;  %v1060_v26 = vmul.f32 1.442695, %v1050_v27  ;;  %v1051_v30 = vsub.f32 %v1004_v54, %v1035_v33 }
 0x86a   :  { %v1038_v3 = vpop.xlane.xlu1 %1037 }
 0x86b   :  { %1835 = vpow2.f32 %v1060_v26  ;;  %v1062_v35 = vmul.f32 1.442695, %v1051_v30  ;;  %v1052_v36 = vsub.f32 %v1009_v55, %v1038_v3  ;;  %v872_v55 = vrot.slane %v2029_v22, %v871_v42 }
 0x86c   :  { %v1041_v4 = vpop.xlane.xlu0 %1040 }
 0x86d   :  { %1837 = vpow2.f32 %v1062_v35  ;;  %v1064_v37 = vmul.f32 1.442695, %v1052_v36  ;;  %v1053_v38 = vsub.f32 %v1012_v8, %v1041_v4  ;;  %v928_v8 = vadd.f32 %v1703_v56, %v872_v55 }
 0x86e   :  { %v1044_v39 = vpop.xlane.xlu1 %1043  ;;  %v920_v10 = vadd.f32 %v919_v18, %v872_v55  ;;  %v923_v12 = vadd.f32 %v922_v15, %v872_v55 }
 0x86f   :  { %1839 = vpow2.f32 %v1064_v37  ;;  %v1066_v40 = vmul.f32 1.442695, %v1053_v38  ;;  %v1054_v41 = vsub.f32 %v1017_v61, %v1044_v39  ;;  %v1117_v17 = vpack.c.bf16 %v928_v8, %v928_v8 }
 0x870   :  { %v1047_v44 = vpop.xlane.xlu0 %1046  ;;  %v1116_v6 = vpack.c.bf16 %v923_v12, %v920_v10 }
 0x871   :  { %v1832_v48 = vpop.eup %1831  ;;  %1841 = vpow2.f32 %v1066_v40  ;;  %v1068_v32 = vmul.f32 1.442695, %v1054_v41  ;;  %v1055_v46 = vsub.f32 %v1020_v2, %v1047_v44  ;;  %v1132_v13 = vsel %vm1130_vm8, %v1117_v17, 0 }
 0x872   :  { %v1072_v47 = vsel %vm1023_vm7, %v1832_v48, 0.0  ;;  %1717 = vmatprep.subr.bf16.mxu0 %v1116_v6 }
 0x873   :  { %v1834_v51 = vpop.eup %1833  ;;  %1843 = vpow2.f32 %v1068_v32  ;;  %v1070_v49 = vmul.f32 1.442695, %v1055_v46  ;;  %1073 = vadd.xlane.f32.xlu1 %v1072_v47  ;;  %1718 = vmatpush3.bf16.msra.mxu0 %v1116_v6 }
 0x874   :  { %v1075_v52 = vsel %vm1023_vm7, %v1834_v51, 0.0  ;;  %1760 = vmatprep.subr.msk.bf16.mxu0 %vm1130_vm8, %v1117_v17 }
 0x875   :  { %v1836_v54 = vpop.eup %1835  ;;  %1845 = vpow2.f32 %v1070_v49  ;;  %1076 = vadd.xlane.f32.xlu0 %v1075_v52  ;;  %v1787_v49 = vld [vmem:[#allocation2 + $0x70] sm:$0xff]   ;;  %v1788_v52 = vld [vmem:[#allocation2 + $0x78] sm:$0xff]  }
 0x876   :  { %v1078_v57 = vsel %vm1023_vm7, %v1836_v54, 0.0 }
 0x877   :  { %v1838_v58 = vpop.eup %1837  ;;  %1079 = vadd.xlane.f32.xlu1 %v1078_v57  ;;  %1720 = vmatpush3.bf16.msra.mxu0 %v1132_v13 }
 0x878   :  { %v1081_v59 = vsel %vm1023_vm7, %v1838_v58, 0.0  ;;  %1729 = vmatprep.subr.bf16.mxu0 %v1923_v0 }
 0x879   :  { %v1840_v53 = vpop.eup %1839  ;;  %1082 = vadd.xlane.f32.xlu0 %v1081_v59 }
 0x87a   :  { %v1084_v5 = vsel %vm1023_vm7, %v1840_v53, 0.0 }
 0x87b   :  { %v1842_v61 = vpop.eup %1841  ;;  %1085 = vadd.xlane.f32.xlu1 %v1084_v5 }
 0x87c   :  { %v1087_v62 = vsel %vm1023_vm7, %v1842_v61, 0.0 }
 0x87d   :  { %v1844_v63 = vpop.eup %1843  ;;  %1088 = vadd.xlane.f32.xlu0 %v1087_v62 }
 0x87e   :  { %v1090_v1 = vsel %vm1023_vm7, %v1844_v63, 0.0 }
 0x87f   :  { %v1846_v2 = vpop.eup %1845  ;;  %1091 = vadd.xlane.f32.xlu1 %v1090_v1 }
 0x880   :  { %v1093_v7 = vsel %vm1023_vm7, %v1846_v2, 0.0 }
 0x881   :  { %1094 = vadd.xlane.f32.xlu0 %v1093_v7 }
 0x900   :  { %v1074_v22 = vpop.xlane.xlu1 %1073 }
 0x901   :  { %1847 = vrcp.f32 %v1074_v22 }
 0x902   :  { %v1077_v23 = vpop.xlane.xlu0 %1076 }
 0x903   :  { %1849 = vrcp.f32 %v1077_v23 }
 0x904   :  { %v1080_v24 = vpop.xlane.xlu1 %1079 }
 0x905   :  { %1851 = vrcp.f32 %v1080_v24 }
 0x906   :  { %v1083_v56 = vpop.xlane.xlu0 %1082 }
 0x907   :  { %1853 = vrcp.f32 %v1083_v56 }
 0x908   :  { %v1086_v18 = vpop.xlane.xlu1 %1085 }
 0x909   :  { %1855 = vrcp.f32 %v1086_v18 }
 0x90a   :  { %v1089_v28 = vpop.xlane.xlu0 %1088 }
 0x90b   :  { %v1848_v16 = vpop.eup %1847  ;;  %1857 = vrcp.f32 %v1089_v28 }
 0x90c   :  { %v1092_v20 = vpop.xlane.xlu1 %1091  ;;  %v1104_v33 = vmul.f32 %v1848_v16, %v1832_v48 }
 0x90d   :  { %v1850_v19 = vpop.eup %1849  ;;  %1859 = vrcp.f32 %v1092_v20 }
 0x90e   :  { %v1095_v27 = vpop.xlane.xlu0 %1094  ;;  %v1105_v26 = vmul.f32 %v1850_v19, %v1834_v51 }
 0x90f   :  { %v1852_v30 = vpop.eup %1851  ;;  %1861 = vrcp.f32 %v1095_v27 }
 0x910   :  { %v1112_v3 = vpack.c.bf16 %v1105_v26, %v1104_v33  ;;  %v1106_v36 = vmul.f32 %v1852_v30, %v1836_v54 }
 0x911   :  { %v1854_v35 = vpop.eup %1853 }
 0x912   :  { %v1107_v4 = vmul.f32 %v1854_v35, %v1838_v58  ;;  %1721 = vmatprep.mubr.msk.bf16.mxu0 %vm1023_vm7, %v1112_v3 }
 0x913   :  { %v1856_v37 = vpop.eup %1855 }
 0x914   :  { %v1113_v38 = vpack.c.bf16 %v1107_v4, %v1106_v36  ;;  %v1108_v40 = vmul.f32 %v1856_v37, %v1840_v53 }
 0x915   :  { %v1858_v39 = vpop.eup %1857 }
 0x916   :  { %1722 = vmatmul.mubr.msk.bf16.vlgmr.msra.gmra.mrb[20].mxu0 %vm1023_vm7, %v1113_v38  ;;  %v1109_v41 = vmul.f32 %v1858_v39, %v1842_v61 }
 0x917   :  { %v1860_v44 = vpop.eup %1859  ;;  %1730 = vmatpush3.bf16.msra.mxu0 %v1787_v49 }
 0x918   :  { %v1114_v32 = vpack.c.bf16 %v1109_v41, %v1108_v40  ;;  %v1110_v48 = vmul.f32 %v1860_v44, %v1844_v63  ;;  %1731 = vmatprep.subr.bf16.mxu0 %v1923_v0 }
 0x919   :  { %v1862_v46 = vpop.eup %1861 }
 0x91a   :  { %1725 = vmatprep.mubr.msk.bf16.mxu0 %vm1023_vm7, %v1114_v32  ;;  %v1111_v47 = vmul.f32 %v1862_v46, %v1846_v2 }
 0x91b   :  { %1732 = vmatpush3.bf16.msra.mxu0 %v1788_v52  ;;  %v1789_v52 = vld [vmem:[#allocation2 + $0x80] sm:$0xff]  }
 0x91c   :  { %v1115_v51 = vpack.c.bf16 %v1111_v47, %v1110_v48  ;;  %1745 = vmatprep.subr.bf16.mxu0 %v1923_v0  ;;  %1738 = vmatpush3.bf16.msra.mxu1 %v1789_v52  ;;  %v1490_v52 = vrot.slane %v2179_v60, %v871_v42 }
 0x91d   :  { %1739 = vmatprep.subr.bf16.mxu1 %v1923_v0 }
 0x91e   :  { %1726 = vmatmul.mubr.msk.bf16.gmra.mrb[24].mxu0 %vm1023_vm7, %v1115_v51 }
 0x91f   :  { %1733 = vmatprep.mubr.msk.bf16.mxu0 %vm1924_vm0, %v1923_v0 }
 0x9e9   :  { %v1723_v54 = vpop.f32.mrb[20].mxu0 }
 0x9ea   :  { %v1201_v57 = vmul.f32 %v1723_v54, %v2052_v43  ;;  %v1168_v58 = vpop.f32.mrb[21].mxu0  ;;  %v1791_v54 = vld [vmem:[%s2342_s5] sm:$0xff]  }
 0x9eb   :  { %v1199_v59 = vmul.f32 %v2035_v25, %v1168_v58  ;;  %v1724_v53 = vpop.f32.mrb[22].mxu0 }
 0x9ec   :  { %v1208_v5 = vsel %vm196_vm1, %v1201_v57, 0.0  ;;  %v1202_v61 = vmul.f32 %v1724_v53, %v2052_v43  ;;  %v1171_v62 = vpop.f32.mrb[23].mxu0  ;;  %v1792_v57 = vld [vmem:[%s2342_s5 + $0x8] sm:$0xff]  }
 0x9ed   :  { %v1207_v55 = vsel %vm196_vm1, %v1199_v59, 0.0  ;;  %v1200_v63 = vmul.f32 %v2035_v25, %v1171_v62 }
 0x9ee   :  { %v1209_v1 = vadd.f32 %v1208_v5, %v1207_v55  ;;  %v1215_v2 = vsel %vm196_vm1, %v1202_v61, 0.0  ;;  %v1313_v55 = vrot.slane %v2179_v60, %v741_v29  ;;  %v1794_v29 = vld [vmem:[%s2342_s5 + $0x18] sm:$0xff]  }
 0x9ef   :  { %v1214_v7 = vsel %vm196_vm1, %v1200_v63, 0.0 }
 0x9f0   :  { %v1216_v8 = vadd.f32 %v1215_v2, %v1214_v7  ;;  %v1319_v7 = vrot.slane %v2179_v60, %v801_v34  ;;  %v1326_v34 = vrot.slane %v2179_v60, %v2024_v21 }
 0x9f1   :  { %v1727_v10 = vpop.f32.mrb[24].mxu0 }
 0x9f2   :  { %v1184_v15 = vpop.f32.mrb[25].mxu0  ;;  %v1205_v12 = vmul.f32 %v1727_v10, %v2073_v50 }
 0x9f3   :  { %v1203_v17 = vmul.f32 %v2057_v45, %v1184_v15  ;;  %v1728_v6 = vpop.f32.mrb[26].mxu0 }
 0x9f4   :  { %v1187_v13 = vpop.f32.mrb[27].mxu0  ;;  %v1206_v22 = vmul.f32 %v1728_v6, %v2073_v50  ;;  %v1212_v24 = vsel %vm196_vm1, %v1205_v12, 0.0  ;;  %v1224_v50 = vsub.s32 7, %v2011_v9 }
 0x9f5   :  { %v1210_v43 = vsel %vm196_vm1, %v1203_v17, 0.0  ;;  %v1204_v25 = vmul.f32 %v2057_v45, %v1187_v13  ;;  %v1871_v45 = vld [vmem:[%s2343_s6] sm:$0xff]  ;;  %v1793_v13 = vld [vmem:[%s2342_s5 + $0x10] sm:$0xff]   ;;  %s1927_s5 = smov [#allocation5]  }
 0x9f6   :  { %v1211_v23 = vadd.f32 %v1210_v43, %v1209_v1  ;;  %v1219_v16 = vsel %vm196_vm1, %v1206_v22, 0.0  ;;  %v1225_v27 = vrot.slane %v1871_v45, %v1224_v50  ;;  %s1506_s17 = sshll.u32 %s1927_s5, 4  ;;  %s1507_s17 = int_to_ptr.vmem [resolvable:$true] %s1506_s17 }
 0x9f7   :  { %v1217_v56 = vsel %vm196_vm1, %v1204_v25, 0.0  ;;  %s1894_s0 = scalar_lea.vmem %s1507_s17, 256  ;;  %p1899_p9 = scmp.lt.s32.totalorder %s1507_s17, %s1507_s17 }
 0x9f8   :  { %v1213_v18 = vadd.f32 %v1212_v24, %v1211_v23  ;;  %v1218_v28 = vadd.f32 %v1217_v56, %v1216_v8  ;;  %p1895_p8 = scmp.ne.s32.totalorder %s1507_s17, %s1894_s0  ;;  %p1900_p10 = scmp.lt.s32.totalorder %s1894_s0, %s1894_s0 }
 0x9fa   :  { %v1220_v20 = vadd.f32 %v1219_v16, %v1218_v28  ;;  %p1901_p11 = por %p1900_p10, %p1899_p9 }
 0x9fc   :  { %v1221_v19 = vpack.c.bf16 %v1220_v20, %v1213_v18  ;;  %p1902_p12 = pnand %p1901_p11, %p1895_p8 }
 0x9fe   :  { %1734 = vmatmul.mubr.msk.bf16.vlgmr.msra.gmra.mrb[28].mxu0 %vm196_vm1, %v1221_v19 }
 0x9ff   :  { %1753 = vmatprep.mubr.msk.bf16.mxu0 %vm1924_vm0, %v1923_v0  ;;  %1746 = vmatpush3.bf16.msra.mxu0 %v1791_v54  ;;  %vm1414_vm0 = vcmask 523264   ;;  %v1496_v54 = vrot.slane %v2179_v60, %v1224_v50 }
 0xa00   :  { %1747 = vmatprep.subr.bf16.mxu0 %v1923_v0 }
 0xa03   :  { %1748 = vmatpush3.bf16.msra.mxu0 %v1792_v57 }
 0xa04   :  { %1749 = vmatprep.subr.bf16.mxu0 %v1923_v0 }
 0xa07   :  { %1750 = vmatpush3.bf16.msra.mxu0 %v1793_v13 }
 0xa08   :  { %1751 = vmatprep.subr.bf16.mxu0 %v1923_v0  ;;  %v1389_v0 = vrot.slane %v2179_v60, %v243_v31 }
 0xa0b   :  { %1752 = vmatpush3.bf16.msra.mxu0 %v1794_v29 }
 0xad1   :  { %v1275_v33 = vpop.f32.mrb[28].mxu0 }
 0xad2   :  { %v1276_v26 = vadd.f32 %v1275_v33, %v1225_v27  ;;  %v1735_v30 = vpop.f32.mrb[29].mxu0 }
 0xad3   :  { %v1278_v3 = vpop.f32.mrb[30].mxu0 }
 0xad4   :  { %v1279_v35 = vadd.f32 %v1278_v3, %v1225_v27  ;;  %v1736_v36 = vpop.f32.mrb[31].mxu0  ;;  %v1282_v4 = vadd.f32 %v1276_v26, %v2185_v11 }
 0xad6   :  { %v1284_v37 = vsel %vm196_vm1, %v1282_v4, 0.0  ;;  %v1283_v38 = vadd.f32 %v1279_v35, %v2187_v14  ;;  %v1790_v14 = vld [vmem:[#allocation2 + $0x88] sm:$0xff]  }
 0xad7   :  { %1285 = vadd.xlane.f32.xlu1 %v1284_v37  ;;  %1740 = vmatpush3.bf16.msra.mxu1 %v1790_v14 }
 0xad8   :  { %v1287_v39 = vsel %vm196_vm1, %v1283_v38, 0.0 }
 0xad9   :  { %1288 = vadd.xlane.f32.xlu0 %v1287_v39 }
 0xb64   :  { %v1286_v40 = vpop.xlane.xlu1 %1285 }
 0xb65   :  { %v1290_v41 = vmul.f32 0.03125, %v1286_v40 }
 0xb66   :  { %v1289_v44 = vpop.xlane.xlu0 %1288 }
 0xb67   :  { %v1292_v32 = vsub.f32 %v1282_v4, %v1290_v41  ;;  %v1291_v46 = vmul.f32 0.03125, %v1289_v44 }
 0xb69   :  { %v1293_v48 = vsub.f32 %v1283_v38, %v1291_v46  ;;  %v1294_v47 = vmul.f32 %v1292_v32, %v1292_v32 }
 0xb6b   :  { %v1296_v51 = vsel %vm196_vm1, %v1294_v47, 0.0  ;;  %v1295_v49 = vmul.f32 %v1293_v48, %v1293_v48 }
 0xb6c   :  { %1297 = vadd.xlane.f32.xlu1 %v1296_v51 }
 0xb6d   :  { %v1299_v11 = vsel %vm196_vm1, %v1295_v49, 0.0 }
 0xb6e   :  { %1300 = vadd.xlane.f32.xlu0 %v1299_v11 }
 0xbf9   :  { %v1298_v58 = vpop.xlane.xlu1 %1297 }
 0xbfa   :  { %v1302_v59 = vmul.f32 0.03125, %v1298_v58 }
 0xbfb   :  { %v1301_v53 = vpop.xlane.xlu0 %1300 }
 0xbfc   :  { %v1304_v5 = vadd.f32 1e-05, %v1302_v59  ;;  %v1303_v61 = vmul.f32 0.03125, %v1301_v53 }
 0xbfe   :  { %1863 = vrsqrt.f32 %v1304_v5  ;;  %v1305_v62 = vadd.f32 1e-05, %v1303_v61 }
 0xc00   :  { %1865 = vrsqrt.f32 %v1305_v62 }
 0xc08   :  { %v1864_v63 = vpop.eup %1863 }
 0xc09   :  { %v1308_v1 = vmul.f32 %v1864_v63, %v1292_v32 }
 0xc0a   :  { %v1866_v2 = vpop.eup %1865 }
 0xc0b   :  { %v1314_v8 = vmul.f32 %v1313_v55, %v1308_v1  ;;  %v1309_v10 = vmul.f32 %v1866_v2, %v1293_v48 }
 0xc0d   :  { %v1315_v15 = vmul.f32 %v1313_v55, %v1309_v10  ;;  %v1320_v12 = vadd.f32 %v1319_v7, %v1314_v8 }
 0xc0f   :  { %v1321_v17 = vadd.f32 %v1319_v7, %v1315_v15 }
 0xc11   :  { %v1322_v6 = vpack.c.bf16 %v1321_v17, %v1320_v12 }
 0xc13   :  { %1742 = vmatmul.mubr.msk.bf16.vlgmr.msra.gmra.mrb[32].mxu1 %vm196_vm1, %v1322_v6 }
 0xce6   :  { %v1376_v43 = vpop.f32.mrb[32].mxu1 }
 0xce7   :  { %v1377_v22 = vadd.f32 %v1376_v43, %v1326_v34  ;;  %v1743_v25 = vpop.f32.mrb[33].mxu1 }
 0xce8   :  { %v1379_v23 = vpop.f32.mrb[34].mxu1 }
 0xce9   :  { %v1380_v24 = vadd.f32 %v1379_v23, %v1326_v34  ;;  %v1744_v56 = vpop.f32.mrb[35].mxu1  ;;  %v1383_v18 = vmax.f32 %v1377_v22, 0.0 }
 0xceb   :  { %v1384_v28 = vmax.f32 %v1380_v24, 0.0 }
 0xced   :  { %v1385_v16 = vpack.c.bf16 %v1384_v28, %v1383_v18 }
 0xcef   :  { %1754 = vmatmul.mubr.msk.bf16.vlgmr.msra.gmra.mrb[32].mxu0 %vm1414_vm0, %v1385_v16 }
 0xdc2   :  { %v1452_v20 = vpop.f32.mrb[32].mxu0 }
 0xdc3   :  { %v1453_v19 = vadd.f32 %v1452_v20, %v1389_v0  ;;  %v1755_v45 = vpop.f32.mrb[33].mxu0 }
 0xdc4   :  { %v1455_v27 = vpop.f32.mrb[34].mxu0 }
 0xdc5   :  { %v1456_v21 = vadd.f32 %v1455_v27, %v1389_v0  ;;  %v1756_v33 = vpop.f32.mrb[35].mxu0  ;;  %v1459_v26 = vadd.f32 %v1453_v19, %v1320_v12 }
 0xdc7   :  { %v1461_v30 = vsel %vm196_vm1, %v1459_v26, 0.0  ;;  %v1460_v3 = vadd.f32 %v1456_v21, %v1321_v17 }
 0xdc8   :  { %1462 = vadd.xlane.f32.xlu1 %v1461_v30 }
 0xdc9   :  { %v1464_v35 = vsel %vm196_vm1, %v1460_v3, 0.0 }
 0xdca   :  { %1465 = vadd.xlane.f32.xlu0 %v1464_v35 }
 0xe55   :  { %v1463_v36 = vpop.xlane.xlu1 %1462 }
 0xe56   :  { %v1467_v4 = vmul.f32 0.03125, %v1463_v36 }
 0xe57   :  { %v1466_v37 = vpop.xlane.xlu0 %1465 }
 0xe58   :  { %v1469_v38 = vsub.f32 %v1459_v26, %v1467_v4  ;;  %v1468_v39 = vmul.f32 0.03125, %v1466_v37 }
 0xe5a   :  { %v1470_v31 = vsub.f32 %v1460_v3, %v1468_v39  ;;  %v1471_v40 = vmul.f32 %v1469_v38, %v1469_v38 }
 0xe5c   :  { %v1473_v41 = vsel %vm196_vm1, %v1471_v40, 0.0  ;;  %v1472_v44 = vmul.f32 %v1470_v31, %v1470_v31 }
 0xe5d   :  { %1474 = vadd.xlane.f32.xlu1 %v1473_v41 }
 0xe5e   :  { %v1476_v32 = vsel %vm196_vm1, %v1472_v44, 0.0 }
 0xe5f   :  { %1477 = vadd.xlane.f32.xlu0 %v1476_v32 }
 0xeea   :  { %v1475_v46 = vpop.xlane.xlu1 %1474 }
 0xeeb   :  { %v1479_v48 = vmul.f32 0.03125, %v1475_v46 }
 0xeec   :  { %v1478_v47 = vpop.xlane.xlu0 %1477 }
 0xeed   :  { %v1481_v51 = vadd.f32 1e-05, %v1479_v48  ;;  %v1480_v49 = vmul.f32 0.03125, %v1478_v47 }
 0xeef   :  { %1867 = vrsqrt.f32 %v1481_v51  ;;  %v1482_v11 = vadd.f32 1e-05, %v1480_v49 }
 0xef1   :  { %1869 = vrsqrt.f32 %v1482_v11 }
 0xef9   :  { %v1868_v14 = vpop.eup %1867 }
 0xefa   :  { %v1485_v57 = vmul.f32 %v1868_v14, %v1469_v38 }
 0xefb   :  { %v1870_v58 = vpop.eup %1869 }
 0xefc   :  { %v1491_v59 = vmul.f32 %v1490_v52, %v1485_v57  ;;  %v1486_v53 = vmul.f32 %v1870_v58, %v1470_v31 }
 0xefe   :  { %v1492_v5 = vmul.f32 %v1490_v52, %v1486_v53  ;;  %v1497_v61 = vadd.f32 %v1496_v54, %v1491_v59 }
 0xf00   :  { %v1498_v62 = vadd.f32 %v1496_v54, %v1492_v5  ;;  %1499 = vst.msk [vmem:[#allocation5] sm:$0xff] %vm196_vm1, %v1497_v61 }
 0xf02   :  { %1500 = vst.msk [vmem:[#allocation5 + $0x8] sm:$0xff] %vm196_vm1, %v1498_v62 }
 0xf03   :  { %1905 = shalt.err (!%p1902_p12)
}
 0xf04   :  { %s1906_s20 = scalar_lea.hbm %s2344_s7, 256 }
 0xf05   :  { %p1907_p13 = scmp.ne.s32.totalorder %s2344_s7, %s1906_s20  ;;  %p1910_p0 = scmp.lt.u32.totalorder %s1906_s20, %s2344_s7 }
 0xf07   :  { %p1912_p1 = pnand %p1910_p0, %p1907_p13 }
 0xf09   :  { %1915 = shalt.err (!%p1912_p1)
}
 0xf0a   :  { %s1928_s24 = smov 128   ;;  %s1929_s25 = smov 8  }
 0xf0b   :  { %1512 = dma.vmem_to_hbm [thread:$0]  %s1507_s17, 256, %s2344_s7, [#allocation4], %s1928_s24, %s1928_s24, %s1929_s25  }
 0xf0c   :  { %1918 = dma.done.wait [#allocation4], 256  }
 0xf0d   :  { %1919 = vsyncadd [#allocation4], 4294967040 }
 0xf0e   :  { %1516 = vsyncpa [#allocation3], 1 }
 0xf0f   :  { %1517 = vsyncpa [#allocation4], 1 }

</bundles_post_ra>
